<compile_context>
chip_gen: v6e
topology: v6e:2x2x1
jax: 0.10.0
libtpu: 0.0.40
codegen_flags: <defaults>
</compile_context>

<pallas_src>
import math

import jax
import jax.numpy as jnp
from jax.experimental import pallas as pl
from jax.experimental.pallas import tpu as pltpu

N_HEAD = 4
HIDDEN = 32
HEAD_DIM = HIDDEN // N_HEAD
LN_EPS = 1e-5


def _layernorm(x, gamma, beta):
    mu = jnp.mean(x, axis=-1, keepdims=True)
    var = jnp.mean((x - mu) ** 2, axis=-1, keepdims=True)
    return (x - mu) * jax.lax.rsqrt(var + LN_EPS) * gamma + beta


def transformer_layer_kernel(
    x_ref,       # (T, D)      target-node features (this tile)
    bias_ref,    # (T, N)      additive adjacency mask: 0 where edge exists, -1e30 elsewhere
    ef_ref,      # (T, D, N)   dense edge attrs, [target, feat, source] (transposed slab)
    wqs_ref,     # (D, 2D)     [W_query | W_skip]
    wkr_ref,     # (D, D+N)    [W_edge^T | K^T]   (K precomputed in the wrapper)
    v_ref,       # (N, D)      V (precomputed in the wrapper)
    we_ref,      # (D, D)      W_edge
    w1_ref,      # (D, D)      FFN linear 1
    w2_ref,      # (D, D)      FFN linear 2
    vecs_ref,    # (8+H, D)    packed bq, bs, g1, be1, b1, b2, g2, be2, headmask rows
    out_ref,     # (T, D)
):
    x_t = x_ref[...]
    bias = bias_ref[...]
    efT = ef_ref[...]
    t, d = x_t.shape
    n = bias.shape[1]
    h = N_HEAD

    vecs = vecs_ref[...]
    b_q, b_s = vecs[0:1, :], vecs[1:2, :]
    g1, be1 = vecs[2:3, :], vecs[3:4, :]
    b1, b2 = vecs[4:5, :], vecs[5:6, :]
    g2, be2 = vecs[6:7, :], vecs[7:8, :]
    headmask = vecs[8:8 + h, :]                        # (H, D): 1 on head h's column block

    # ---- target-side projections (query + root/skip) in one lane-dense MXU matmul ----
    proj = jnp.dot(x_t, wqs_ref[...], preferred_element_type=jnp.float32)    # (T, 2D)
    q = proj[:, :d] + b_q                              # (T, D)
    skip = proj[:, d:] + b_s                           # (T, D)  lin_skip (root weight)

    # ---- head-masked query expansion: qm[t*H+h, :] keeps only head h's columns of q[t] ----
    qm = (q[:, None, :] * headmask[None, :, :]).reshape(t * h, d)            # (T*H, D)

    # ---- [R | node-score] = qm @ [We^T | K^T]:
    #      R[t,h,:]          = We_h @ q_h[t]          (folds lin_edge into the query side)
    #      node_score[t,h,j] = <q_h[t], k_h[j]>
    #      one plain MXU matmul covers all heads ----
    rk = jnp.dot(qm, wkr_ref[...], preferred_element_type=jnp.float32)       # (T*H, D+N)
    r3 = rk[:, :d].reshape(t, h, d)                    # (T, H, D)
    score_n = rk[:, d:].reshape(t, h, n)               # (T, H, N)

    # ---- edge score: batched-over-target matmul (H, D) x (D, N); slab pass #1 ----
    score_e = jnp.einsum('thd,tdj->thj', r3, efT,
                         preferred_element_type=jnp.float32)                 # (T, H, N)

    score = (score_n + score_e) * (1.0 / math.sqrt(HEAD_DIM)) + bias[:, None, :]

    # ---- masked softmax over sources (additive -1e30 bias, no compare/select).
    #      Isolated targets (no incoming edge) get a finite uniform alpha here
    #      (reference PyG would produce NaN). ----
    m = jnp.max(score, axis=-1, keepdims=True)
    p = jnp.exp(score - m)
    denom = jnp.sum(p, axis=-1, keepdims=True)         # >= 1 (row max contributes exp(0))
    inv = pl.reciprocal(denom, approx=True)            # EUP slot
    inv = inv * (2.0 - denom * inv)                    # one Newton step -> exact to f32 ulp
    alpha = p * inv                                    # (T, H, N)

    # ---- aggregation: sum_j alpha[t,h,j] * (v_h[j] + (ef[t,j] @ We)_h); slab pass #2 ----
    s3 = jnp.einsum('thj,tdj->thd', alpha, efT,
                    preferred_element_type=jnp.float32)                      # (T, H, D)
    alpha2 = alpha.reshape(t * h, n)
    s2 = s3.reshape(t * h, d)
    full = (jnp.dot(alpha2, v_ref[...], preferred_element_type=jnp.float32) +
            jnp.dot(s2, we_ref[...], preferred_element_type=jnp.float32))    # (T*H, D)
    # keep each head's own output-column block and collapse heads -> (T, D), concat-free
    agg = jnp.sum(full.reshape(t, h, d) * headmask[None, :, :], axis=1)      # (T, D)

    mha = agg + skip                                                          # (T, D)

    # ---- residual + norm1, FFN (SiLU; dropout == identity in eval), residual + norm2 ----
    h1 = x_t + _layernorm(mha, g1, be1)
    ff = jnp.dot(h1, w1_ref[...], preferred_element_type=jnp.float32) + b1
    ff = ff * jax.lax.logistic(ff)
    ff = jnp.dot(ff, w2_ref[...], preferred_element_type=jnp.float32) + b2
    out_ref[...] = h1 + _layernorm(ff, g2, be2)


def transformer_layer(node_attr, edge_index, edge_attr, params, t_tile=None):
    """node_attr: (N, D) f32; edge_index: (2, E) int32 (row 0 = src, row 1 = dst); edge_attr: (E, D)."""
    N, D = node_attr.shape
    H, C = N_HEAD, HEAD_DIM
    src, dst = edge_index[0], edge_index[1]

    if t_tile is None:
        t_tile = next((tt for tt in (256, 128, 64, 32, 16, 8) if N % tt == 0), N)
    t_tile = min(t_tile, N)
    assert N % t_tile == 0, "target tile must divide N"

    # --- glue (plain XLA): dense adjacency -> additive mask bias, dense edge slab transposed
    #     to [target, feat, source] so the VMEM lane dim is the source count. Assumes no
    #     duplicate (src, dst) pairs (duplicates overwrite instead of being separate messages).
    adj = jnp.zeros((N, N), jnp.float32).at[dst, src].set(1.0)
    mask_bias = (adj - 1.0) * 1e30
    ef_tdn = (jnp.zeros((N, N, D), jnp.float32).at[dst, src].set(edge_attr)
              .transpose(0, 2, 1))                                           # (N, D, N)

    # --- hoisted source-side projections (computed once, not once per grid step) ---
    k = node_attr @ params['wk'] + params['bk']                              # (N, D)
    v = node_attr @ params['wv'] + params['bv']                              # (N, D)

    w_qs = jnp.concatenate([params['wq'], params['ws']], axis=1)             # (D, 2D)
    w_kr = jnp.concatenate([params['we'].T, k.T], axis=1)                    # (D, D+N)

    headmask = (jnp.arange(D)[None, :] // C == jnp.arange(H)[:, None]).astype(jnp.float32)
    vecs = jnp.concatenate([params['bq'], params['bs'],
                            params['g1'], params['be1'],
                            params['b1'], params['b2'],
                            params['g2'], params['be2'], headmask], axis=0)  # (8+H, D)

    args = (node_attr, mask_bias, ef_tdn, w_qs, w_kr, v, params['we'],
            params['w1'], params['w2'], vecs)

    def resident(a):
        nd = a.ndim
        return pl.BlockSpec(a.shape, lambda i, _nd=nd: (0,) * _nd)

    grid = (N // t_tile,)
    in_specs = [
        pl.BlockSpec((t_tile, D), lambda i: (i, 0)),        # x tile (targets)
        pl.BlockSpec((t_tile, N), lambda i: (i, 0)),        # additive adjacency-mask tile
        pl.BlockSpec((t_tile, D, N), lambda i: (i, 0, 0)),  # transposed edge-attr tile
        resident(w_qs), resident(w_kr), resident(v), resident(params['we']),
        resident(params['w1']), resident(params['w2']), resident(vecs),
    ]
    out_spec = pl.BlockSpec((t_tile, D), lambda i: (i, 0))

    # explicit VMEM budget: double-buffered streamed tiles + resident weights + headroom
    itemsize = 4
    tile_bytes = itemsize * t_tile * (D + N + D * N + D)     # x + mask + ef + out per step
    resident_bytes = itemsize * (w_qs.size + w_kr.size + v.size + params['we'].size +
                                 params['w1'].size + params['w2'].size + vecs.size)
    vmem_bytes = int(2.5 * tile_bytes + 2 * resident_bytes) + (4 << 20)
    vmem_bytes = min(vmem_bytes, 64 << 20)                   # safe on v5e/v6e/v7x

    return pl.pallas_call(
        transformer_layer_kernel,
        out_shape=jax.ShapeDtypeStruct((N, D), jnp.float32),
        grid=grid,
        in_specs=in_specs,
        out_specs=out_spec,
        compiler_params=pltpu.CompilerParams(
            dimension_semantics=("parallel",),
            vmem_limit_bytes=vmem_bytes),
    )(*args)


def init_params(key, d):
    ks = jax.random.split(key, 16)

    def lin_w(k_, din, dout):
        return jax.random.normal(k_, (din, dout), jnp.float32) / math.sqrt(din)

    def lin_b(k_, dout):
        return 0.05 * jax.random.normal(k_, (1, dout), jnp.float32)

    return dict(
        wq=lin_w(ks[0], d, d), bq=lin_b(ks[1], d),
        wk=lin_w(ks[2], d, d), bk=lin_b(ks[3], d),
        wv=lin_w(ks[4], d, d), bv=lin_b(ks[5], d),
        we=lin_w(ks[6], d, d),                       # lin_edge: bias=False
        ws=lin_w(ks[7], d, d), bs=lin_b(ks[8], d),   # lin_skip (root weight)
        g1=1.0 + 0.1 * jax.random.normal(ks[9], (1, d), jnp.float32),
        be1=0.05 * jax.random.normal(ks[10], (1, d), jnp.float32),
        w1=lin_w(ks[11], d, d), b1=lin_b(ks[12], d),
        w2=lin_w(ks[13], d, d), b2=lin_b(ks[14], d),
        g2=1.0 + 0.1 * jax.random.normal(ks[15], (1, d), jnp.float32),
        be2=jnp.zeros((1, d), jnp.float32),
    )


def reference(node_attr, edge_index, edge_attr, p):
    """Pure-JAX edge-list reference (mirrors PyG TransformerConv + FFN + norms, eval mode)."""
    N, D = node_attr.shape
    H, C = N_HEAD, HEAD_DIM
    src, dst = edge_index[0], edge_index[1]
    x = node_attr
    q = x @ p['wq'] + p['bq']
    k = x @ p['wk'] + p['bk']
    v = x @ p['wv'] + p['bv']
    ef = edge_attr @ p['we']
    q_i = q[dst].reshape(-1, H, C)
    k_j = (k[src] + ef).reshape(-1, H, C)
    v_j = (v[src] + ef).reshape(-1, H, C)
    alpha = (q_i * k_j).sum(-1) / math.sqrt(C)                   # (E, H)
    m = jax.ops.segment_max(alpha, dst, num_segments=N)
    pe = jnp.exp(alpha - m[dst])
    denom = jax.ops.segment_sum(pe, dst, num_segments=N)
    alpha = pe / denom[dst]
    out = jax.ops.segment_sum(alpha[..., None] * v_j, dst, num_segments=N)
    out = out.reshape(N, D) + x @ p['ws'] + p['bs']

    def ln(y, g, b):
        mu = y.mean(-1, keepdims=True)
        var = ((y - mu) ** 2).mean(-1, keepdims=True)
        return (y - mu) / jnp.sqrt(var + LN_EPS) * g + b

    h1 = x + ln(out, p['g1'], p['be1'])
    ff = h1 @ p['w1'] + p['b1']
    ff = ff * jax.nn.sigmoid(ff)
    ff = ff @ p['w2'] + p['b2']
    return h1 + ln(ff, p['g2'], p['be2'])


if __name__ == "__main__":
    key = jax.random.PRNGKey(0)
    k_node, k_edge, k_param = jax.random.split(key, 3)

    N = 8
    node_attr = jax.random.normal(k_node, (N, HIDDEN), jnp.float32)

    # Deterministic edge list: each node i receives edges from (i+1)%N and (i+2)%N.
    src = jnp.array([(i + 1) % N for i in range(N)] + [(i + 2) % N for i in range(N)],
                    jnp.int32)
    dst = jnp.array(list(range(N)) * 2, jnp.int32)
    edge_index = jnp.stack([src, dst])           # (2, E), E = 16
    edge_attr = jax.random.normal(k_edge, (edge_index.shape[1], HIDDEN), jnp.float32)

    params = init_params(k_param, HIDDEN)

    out = transformer_layer(node_attr, edge_index, edge_attr, params)
    out = jax.block_until_ready(out)

    ref = reference(node_attr, edge_index, edge_attr, params)
    assert out.shape == (N, HIDDEN)
    assert jnp.allclose(out, ref, atol=2e-3, rtol=2e-3), float(jnp.max(jnp.abs(out - ref)))
    # TODO(synk): dropout (p=0.2) inside TransformerConv attention and the FFN is identity
    #             here (eval mode); the unused `self.activation` (softplus) attribute has no
    #             forward-pass effect.
    print("KERNEL_OK")
</pallas_src>

<mosaic_0001>
module attributes {stable_mosaic.version = 11 : i64} {
  func.func @transformer_layer_kernel(%arg0: i32, %arg1: memref<8x32xf32, #tpu.memory_space<vmem>>, %arg2: memref<8x8xf32, #tpu.memory_space<vmem>>, %arg3: memref<8x32x8xf32, #tpu.memory_space<vmem>>, %arg4: memref<32x64xf32, #tpu.memory_space<vmem>>, %arg5: memref<32x40xf32, #tpu.memory_space<vmem>>, %arg6: memref<8x32xf32, #tpu.memory_space<vmem>>, %arg7: memref<32x32xf32, #tpu.memory_space<vmem>>, %arg8: memref<32x32xf32, #tpu.memory_space<vmem>>, %arg9: memref<32x32xf32, #tpu.memory_space<vmem>>, %arg10: memref<12x32xf32, #tpu.memory_space<vmem>>, %arg11: memref<8x32xf32, #tpu.memory_space<vmem>>) attributes {dimension_semantics = [#tpu.dimension_semantics<parallel>], iteration_bounds = array<i64: 1>, scalar_prefetch = 0 : i64, scratch_operands = 0 : i64, tpu.core_type = #tpu.core_type<tc>, window_params = [{transform_indices = @transform_0, window_bounds = array<i64: 8, 32>}, {transform_indices = @transform_1, window_bounds = array<i64: 8, 8>}, {transform_indices = @transform_2, window_bounds = array<i64: 8, 32, 8>}, {pipeline_mode = #tpu.pipeline_mode<synchronous>, transform_indices = @transform_3, window_bounds = array<i64: 32, 64>}, {pipeline_mode = #tpu.pipeline_mode<synchronous>, transform_indices = @transform_4, window_bounds = array<i64: 32, 40>}, {pipeline_mode = #tpu.pipeline_mode<synchronous>, transform_indices = @transform_5, window_bounds = array<i64: 8, 32>}, {pipeline_mode = #tpu.pipeline_mode<synchronous>, transform_indices = @transform_6, window_bounds = array<i64: 32, 32>}, {pipeline_mode = #tpu.pipeline_mode<synchronous>, transform_indices = @transform_7, window_bounds = array<i64: 32, 32>}, {pipeline_mode = #tpu.pipeline_mode<synchronous>, transform_indices = @transform_8, window_bounds = array<i64: 32, 32>}, {pipeline_mode = #tpu.pipeline_mode<synchronous>, transform_indices = @transform_9, window_bounds = array<i64: 12, 32>}, {transform_indices = @transform_10, window_bounds = array<i64: 8, 32>}]} {
    %c0 = arith.constant 0 : index
    %c0_0 = arith.constant 0 : index
    %0 = vector.load %arg1[%c0, %c0_0] : memref<8x32xf32, #tpu.memory_space<vmem>>, vector<8x32xf32>
    %c0_1 = arith.constant 0 : index
    %c0_2 = arith.constant 0 : index
    %1 = vector.load %arg2[%c0_1, %c0_2] : memref<8x8xf32, #tpu.memory_space<vmem>>, vector<8x8xf32>
    %c0_3 = arith.constant 0 : index
    %c0_4 = arith.constant 0 : index
    %c0_5 = arith.constant 0 : index
    %2 = vector.load %arg3[%c0_3, %c0_4, %c0_5] : memref<8x32x8xf32, #tpu.memory_space<vmem>>, vector<8x32x8xf32>
    %c0_6 = arith.constant 0 : index
    %c0_7 = arith.constant 0 : index
    %3 = vector.load %arg10[%c0_6, %c0_7] : memref<12x32xf32, #tpu.memory_space<vmem>>, vector<12x32xf32>
    %4 = vector.extract_strided_slice %3 {offsets = [0, 0], sizes = [1, 32], strides = [1, 1]} : vector<12x32xf32> to vector<1x32xf32>
    %5 = vector.extract_strided_slice %3 {offsets = [1, 0], sizes = [1, 32], strides = [1, 1]} : vector<12x32xf32> to vector<1x32xf32>
    %6 = vector.extract_strided_slice %3 {offsets = [2, 0], sizes = [1, 32], strides = [1, 1]} : vector<12x32xf32> to vector<1x32xf32>
    %7 = vector.extract_strided_slice %3 {offsets = [3, 0], sizes = [1, 32], strides = [1, 1]} : vector<12x32xf32> to vector<1x32xf32>
    %8 = vector.extract_strided_slice %3 {offsets = [4, 0], sizes = [1, 32], strides = [1, 1]} : vector<12x32xf32> to vector<1x32xf32>
    %9 = vector.extract_strided_slice %3 {offsets = [5, 0], sizes = [1, 32], strides = [1, 1]} : vector<12x32xf32> to vector<1x32xf32>
    %10 = vector.extract_strided_slice %3 {offsets = [6, 0], sizes = [1, 32], strides = [1, 1]} : vector<12x32xf32> to vector<1x32xf32>
    %11 = vector.extract_strided_slice %3 {offsets = [7, 0], sizes = [1, 32], strides = [1, 1]} : vector<12x32xf32> to vector<1x32xf32>
    %12 = vector.extract_strided_slice %3 {offsets = [8, 0], sizes = [4, 32], strides = [1, 1]} : vector<12x32xf32> to vector<4x32xf32>
    %c0_8 = arith.constant 0 : index
    %c0_9 = arith.constant 0 : index
    %13 = vector.load %arg4[%c0_8, %c0_9] : memref<32x64xf32, #tpu.memory_space<vmem>>, vector<32x64xf32>
    %cst = arith.constant dense<0.000000e+00> : vector<8x64xf32>
    %14 = tpu.matmul %0, %13, %cst {dimension_numbers = #tpu.dot_dimension_numbers<[1], [0], [0], [1], [0, 0, 1, 1], [], []>} : vector<8x32xf32>, vector<32x64xf32>, vector<8x64xf32> -> vector<8x64xf32>
    %15 = vector.extract_strided_slice %14 {offsets = [0, 0], sizes = [8, 32], strides = [1, 1]} : vector<8x64xf32> to vector<8x32xf32>
    %16 = vector.broadcast %4 : vector<1x32xf32> to vector<8x32xf32>
    %17 = arith.addf %15, %16 : vector<8x32xf32>
    %18 = vector.extract_strided_slice %14 {offsets = [0, 32], sizes = [8, 32], strides = [1, 1]} : vector<8x64xf32> to vector<8x32xf32>
    %19 = vector.broadcast %5 : vector<1x32xf32> to vector<8x32xf32>
    %20 = arith.addf %18, %19 : vector<8x32xf32>
    %21 = vector.shape_cast %17 : vector<8x32xf32> to vector<8x1x32xf32>
    %22 = vector.shape_cast %12 : vector<4x32xf32> to vector<1x4x32xf32>
    %23 = vector.broadcast %21 : vector<8x1x32xf32> to vector<8x4x32xf32>
    %24 = vector.broadcast %22 : vector<1x4x32xf32> to vector<8x4x32xf32>
    %25 = arith.mulf %23, %24 : vector<8x4x32xf32>
    %26 = vector.shape_cast %25 : vector<8x4x32xf32> to vector<32x32xf32>
    %c0_10 = arith.constant 0 : index
    %c0_11 = arith.constant 0 : index
    %27 = vector.load %arg5[%c0_10, %c0_11] : memref<32x40xf32, #tpu.memory_space<vmem>>, vector<32x40xf32>
    %cst_12 = arith.constant dense<0.000000e+00> : vector<32x40xf32>
    %28 = tpu.matmul %26, %27, %cst_12 {dimension_numbers = #tpu.dot_dimension_numbers<[1], [0], [0], [1], [0, 0, 1, 1], [], []>} : vector<32x32xf32>, vector<32x40xf32>, vector<32x40xf32> -> vector<32x40xf32>
    %29 = vector.extract_strided_slice %28 {offsets = [0, 0], sizes = [32, 32], strides = [1, 1]} : vector<32x40xf32> to vector<32x32xf32>
    %30 = vector.shape_cast %29 : vector<32x32xf32> to vector<8x4x32xf32>
    %31 = vector.extract_strided_slice %28 {offsets = [0, 32], sizes = [32, 8], strides = [1, 1]} : vector<32x40xf32> to vector<32x8xf32>
    %32 = vector.shape_cast %31 : vector<32x8xf32> to vector<8x4x8xf32>
    "tpu.trace_start"() <{level = 10 : i32, message = "thd,tdj->thj"}> : () -> ()
    %cst_13 = arith.constant dense<0.000000e+00> : vector<8x4x8xf32>
    %33 = tpu.matmul %30, %2, %cst_13 {dimension_numbers = #tpu.dot_dimension_numbers<[2], [1], [1], [2], [0, 0, 0, 1, 1, 2], [0], [0]>} : vector<8x4x32xf32>, vector<8x32x8xf32>, vector<8x4x8xf32> -> vector<8x4x8xf32>
    "tpu.trace_stop"() : () -> ()
    %34 = arith.addf %32, %33 : vector<8x4x8xf32>
    %cst_14 = arith.constant 0.353553385 : f32
    %35 = vector.broadcast %cst_14 : f32 to vector<8x4x8xf32>
    %36 = arith.mulf %34, %35 : vector<8x4x8xf32>
    %37 = vector.shape_cast %1 : vector<8x8xf32> to vector<8x1x8xf32>
    %38 = vector.broadcast %37 : vector<8x1x8xf32> to vector<8x4x8xf32>
    %39 = arith.addf %36, %38 : vector<8x4x8xf32>
    %cst_15 = arith.constant dense<0xFF800000> : vector<8x4xf32>
    %40 = vector.multi_reduction <maximumf>, %39, %cst_15 [2] : vector<8x4x8xf32> to vector<8x4xf32>
    %41 = vector.shape_cast %40 : vector<8x4xf32> to vector<8x4x1xf32>
    %42 = vector.broadcast %41 : vector<8x4x1xf32> to vector<8x4x8xf32>
    %43 = arith.subf %39, %42 : vector<8x4x8xf32>
    %44 = math.exp %43 : vector<8x4x8xf32>
    %cst_16 = arith.constant dense<0.000000e+00> : vector<8x4xf32>
    %45 = vector.multi_reduction <add>, %44, %cst_16 [2] : vector<8x4x8xf32> to vector<8x4xf32>
    %46 = vector.shape_cast %45 : vector<8x4xf32> to vector<8x4x1xf32>
    %47 = tpu.reciprocal %46 {approx = true} : vector<8x4x1xf32> -> vector<8x4x1xf32>
    %48 = arith.mulf %46, %47 : vector<8x4x1xf32>
    %cst_17 = arith.constant 2.000000e+00 : f32
    %49 = vector.broadcast %cst_17 : f32 to vector<8x4x1xf32>
    %50 = arith.subf %49, %48 : vector<8x4x1xf32>
    %51 = arith.mulf %47, %50 : vector<8x4x1xf32>
    %52 = vector.broadcast %51 : vector<8x4x1xf32> to vector<8x4x8xf32>
    %53 = arith.mulf %44, %52 : vector<8x4x8xf32>
    "tpu.trace_start"() <{level = 10 : i32, message = "thj,tdj->thd"}> : () -> ()
    %cst_18 = arith.constant dense<0.000000e+00> : vector<8x4x32xf32>
    %54 = tpu.matmul %53, %2, %cst_18 {dimension_numbers = #tpu.dot_dimension_numbers<[2], [2], [1], [1], [0, 0, 0, 1, 1, 1], [0], [0]>} : vector<8x4x8xf32>, vector<8x32x8xf32>, vector<8x4x32xf32> -> vector<8x4x32xf32>
    "tpu.trace_stop"() : () -> ()
    %55 = vector.shape_cast %53 : vector<8x4x8xf32> to vector<32x8xf32>
    %56 = vector.shape_cast %54 : vector<8x4x32xf32> to vector<32x32xf32>
    %c0_19 = arith.constant 0 : index
    %c0_20 = arith.constant 0 : index
    %57 = vector.load %arg6[%c0_19, %c0_20] : memref<8x32xf32, #tpu.memory_space<vmem>>, vector<8x32xf32>
    %cst_21 = arith.constant dense<0.000000e+00> : vector<32x32xf32>
    %58 = tpu.matmul %55, %57, %cst_21 {dimension_numbers = #tpu.dot_dimension_numbers<[1], [0], [0], [1], [0, 0, 1, 1], [], []>} : vector<32x8xf32>, vector<8x32xf32>, vector<32x32xf32> -> vector<32x32xf32>
    %c0_22 = arith.constant 0 : index
    %c0_23 = arith.constant 0 : index
    %59 = vector.load %arg7[%c0_22, %c0_23] : memref<32x32xf32, #tpu.memory_space<vmem>>, vector<32x32xf32>
    %cst_24 = arith.constant dense<0.000000e+00> : vector<32x32xf32>
    %60 = tpu.matmul %56, %59, %cst_24 {dimension_numbers = #tpu.dot_dimension_numbers<[1], [0], [0], [1], [0, 0, 1, 1], [], []>} : vector<32x32xf32>, vector<32x32xf32>, vector<32x32xf32> -> vector<32x32xf32>
    %61 = arith.addf %58, %60 : vector<32x32xf32>
    %62 = vector.shape_cast %61 : vector<32x32xf32> to vector<8x4x32xf32>
    %63 = vector.shape_cast %12 : vector<4x32xf32> to vector<1x4x32xf32>
    %64 = vector.broadcast %63 : vector<1x4x32xf32> to vector<8x4x32xf32>
    %65 = arith.mulf %62, %64 : vector<8x4x32xf32>
    %cst_25 = arith.constant dense<0.000000e+00> : vector<8x32xf32>
    %66 = vector.multi_reduction <add>, %65, %cst_25 [1] : vector<8x4x32xf32> to vector<8x32xf32>
    %67 = arith.addf %66, %20 : vector<8x32xf32>
    %cst_26 = arith.constant dense<0.000000e+00> : vector<8xf32>
    %68 = vector.multi_reduction <add>, %67, %cst_26 [1] : vector<8x32xf32> to vector<8xf32>
    %69 = vector.shape_cast %68 : vector<8xf32> to vector<8x1xf32>
    %cst_27 = arith.constant 3.200000e+01 : f32
    %70 = vector.broadcast %cst_27 : f32 to vector<8x1xf32>
    %71 = arith.divf %69, %70 : vector<8x1xf32>
    %72 = vector.broadcast %71 : vector<8x1xf32> to vector<8x32xf32>
    %73 = arith.subf %67, %72 : vector<8x32xf32>
    %74 = arith.mulf %73, %73 : vector<8x32xf32>
    %cst_28 = arith.constant dense<0.000000e+00> : vector<8xf32>
    %75 = vector.multi_reduction <add>, %74, %cst_28 [1] : vector<8x32xf32> to vector<8xf32>
    %76 = vector.shape_cast %75 : vector<8xf32> to vector<8x1xf32>
    %cst_29 = arith.constant 3.200000e+01 : f32
    %77 = vector.broadcast %cst_29 : f32 to vector<8x1xf32>
    %78 = arith.divf %76, %77 : vector<8x1xf32>
    %79 = vector.broadcast %71 : vector<8x1xf32> to vector<8x32xf32>
    %80 = arith.subf %67, %79 : vector<8x32xf32>
    %cst_30 = arith.constant 9.99999974E-6 : f32
    %81 = vector.broadcast %cst_30 : f32 to vector<8x1xf32>
    %82 = arith.addf %78, %81 : vector<8x1xf32>
    %83 = math.rsqrt %82 : vector<8x1xf32>
    %84 = vector.broadcast %83 : vector<8x1xf32> to vector<8x32xf32>
    %85 = arith.mulf %80, %84 : vector<8x32xf32>
    %86 = vector.broadcast %6 : vector<1x32xf32> to vector<8x32xf32>
    %87 = arith.mulf %85, %86 : vector<8x32xf32>
    %88 = vector.broadcast %7 : vector<1x32xf32> to vector<8x32xf32>
    %89 = arith.addf %87, %88 : vector<8x32xf32>
    %90 = arith.addf %0, %89 : vector<8x32xf32>
    %c0_31 = arith.constant 0 : index
    %c0_32 = arith.constant 0 : index
    %91 = vector.load %arg8[%c0_31, %c0_32] : memref<32x32xf32, #tpu.memory_space<vmem>>, vector<32x32xf32>
    %cst_33 = arith.constant dense<0.000000e+00> : vector<8x32xf32>
    %92 = tpu.matmul %90, %91, %cst_33 {dimension_numbers = #tpu.dot_dimension_numbers<[1], [0], [0], [1], [0, 0, 1, 1], [], []>} : vector<8x32xf32>, vector<32x32xf32>, vector<8x32xf32> -> vector<8x32xf32>
    %93 = vector.broadcast %8 : vector<1x32xf32> to vector<8x32xf32>
    %94 = arith.addf %92, %93 : vector<8x32xf32>
    %95 = arith.negf %94 : vector<8x32xf32>
    %96 = math.exp %95 : vector<8x32xf32>
    %cst_34 = arith.constant 1.000000e+00 : f32
    %97 = vector.broadcast %cst_34 : f32 to vector<8x32xf32>
    %98 = arith.addf %97, %96 : vector<8x32xf32>
    %99 = arith.divf %97, %98 : vector<8x32xf32>
    %100 = arith.mulf %94, %99 : vector<8x32xf32>
    %c0_35 = arith.constant 0 : index
    %c0_36 = arith.constant 0 : index
    %101 = vector.load %arg9[%c0_35, %c0_36] : memref<32x32xf32, #tpu.memory_space<vmem>>, vector<32x32xf32>
    %cst_37 = arith.constant dense<0.000000e+00> : vector<8x32xf32>
    %102 = tpu.matmul %100, %101, %cst_37 {dimension_numbers = #tpu.dot_dimension_numbers<[1], [0], [0], [1], [0, 0, 1, 1], [], []>} : vector<8x32xf32>, vector<32x32xf32>, vector<8x32xf32> -> vector<8x32xf32>
    %103 = vector.broadcast %9 : vector<1x32xf32> to vector<8x32xf32>
    %104 = arith.addf %102, %103 : vector<8x32xf32>
    %cst_38 = arith.constant dense<0.000000e+00> : vector<8xf32>
    %105 = vector.multi_reduction <add>, %104, %cst_38 [1] : vector<8x32xf32> to vector<8xf32>
    %106 = vector.shape_cast %105 : vector<8xf32> to vector<8x1xf32>
    %cst_39 = arith.constant 3.200000e+01 : f32
    %107 = vector.broadcast %cst_39 : f32 to vector<8x1xf32>
    %108 = arith.divf %106, %107 : vector<8x1xf32>
    %109 = vector.broadcast %108 : vector<8x1xf32> to vector<8x32xf32>
    %110 = arith.subf %104, %109 : vector<8x32xf32>
    %111 = arith.mulf %110, %110 : vector<8x32xf32>
    %cst_40 = arith.constant dense<0.000000e+00> : vector<8xf32>
    %112 = vector.multi_reduction <add>, %111, %cst_40 [1] : vector<8x32xf32> to vector<8xf32>
    %113 = vector.shape_cast %112 : vector<8xf32> to vector<8x1xf32>
    %cst_41 = arith.constant 3.200000e+01 : f32
    %114 = vector.broadcast %cst_41 : f32 to vector<8x1xf32>
    %115 = arith.divf %113, %114 : vector<8x1xf32>
    %116 = vector.broadcast %108 : vector<8x1xf32> to vector<8x32xf32>
    %117 = arith.subf %104, %116 : vector<8x32xf32>
    %cst_42 = arith.constant 9.99999974E-6 : f32
    %118 = vector.broadcast %cst_42 : f32 to vector<8x1xf32>
    %119 = arith.addf %115, %118 : vector<8x1xf32>
    %120 = math.rsqrt %119 : vector<8x1xf32>
    %121 = vector.broadcast %120 : vector<8x1xf32> to vector<8x32xf32>
    %122 = arith.mulf %117, %121 : vector<8x32xf32>
    %123 = vector.broadcast %10 : vector<1x32xf32> to vector<8x32xf32>
    %124 = arith.mulf %122, %123 : vector<8x32xf32>
    %125 = vector.broadcast %11 : vector<1x32xf32> to vector<8x32xf32>
    %126 = arith.addf %124, %125 : vector<8x32xf32>
    %127 = arith.addf %90, %126 : vector<8x32xf32>
    %c0_43 = arith.constant 0 : index
    %c0_44 = arith.constant 0 : index
    %128 = vector.load %arg11[%c0_43, %c0_44] : memref<8x32xf32, #tpu.memory_space<vmem>>, vector<8x32xf32>
    tpu.vector_store %arg11[%c0_43, %c0_44], %127 {strides = array<i32>} : memref<8x32xf32, #tpu.memory_space<vmem>>, vector<8x32xf32>,
    return
  }
  func.func @transform_0(%arg0: i32) -> (i32, i32) {
    %c0_i32 = arith.constant 0 : i32
    %c0_i32_0 = arith.constant 0 : i32
    return %arg0, %c0_i32 : i32, i32
  }
  func.func @transform_1(%arg0: i32) -> (i32, i32) {
    %c0_i32 = arith.constant 0 : i32
    %c0_i32_0 = arith.constant 0 : i32
    return %arg0, %c0_i32 : i32, i32
  }
  func.func @transform_2(%arg0: i32) -> (i32, i32, i32) {
    %c0_i32 = arith.constant 0 : i32
    %c0_i32_0 = arith.constant 0 : i32
    %c0_i32_1 = arith.constant 0 : i32
    return %arg0, %c0_i32, %c0_i32_0 : i32, i32, i32
  }
  func.func @transform_3(%arg0: i32) -> (i32, i32) {
    %c0_i32 = arith.constant 0 : i32
    %c0_i32_0 = arith.constant 0 : i32
    %c0_i32_1 = arith.constant 0 : i32
    return %c0_i32, %c0_i32_0 : i32, i32
  }
  func.func @transform_4(%arg0: i32) -> (i32, i32) {
    %c0_i32 = arith.constant 0 : i32
    %c0_i32_0 = arith.constant 0 : i32
    %c0_i32_1 = arith.constant 0 : i32
    return %c0_i32, %c0_i32_0 : i32, i32
  }
  func.func @transform_5(%arg0: i32) -> (i32, i32) {
    %c0_i32 = arith.constant 0 : i32
    %c0_i32_0 = arith.constant 0 : i32
    %c0_i32_1 = arith.constant 0 : i32
    return %c0_i32, %c0_i32_0 : i32, i32
  }
  func.func @transform_6(%arg0: i32) -> (i32, i32) {
    %c0_i32 = arith.constant 0 : i32
    %c0_i32_0 = arith.constant 0 : i32
    %c0_i32_1 = arith.constant 0 : i32
    return %c0_i32, %c0_i32_0 : i32, i32
  }
  func.func @transform_7(%arg0: i32) -> (i32, i32) {
    %c0_i32 = arith.constant 0 : i32
    %c0_i32_0 = arith.constant 0 : i32
    %c0_i32_1 = arith.constant 0 : i32
    return %c0_i32, %c0_i32_0 : i32, i32
  }
  func.func @transform_8(%arg0: i32) -> (i32, i32) {
    %c0_i32 = arith.constant 0 : i32
    %c0_i32_0 = arith.constant 0 : i32
    %c0_i32_1 = arith.constant 0 : i32
    return %c0_i32, %c0_i32_0 : i32, i32
  }
  func.func @transform_9(%arg0: i32) -> (i32, i32) {
    %c0_i32 = arith.constant 0 : i32
    %c0_i32_0 = arith.constant 0 : i32
    %c0_i32_1 = arith.constant 0 : i32
    return %c0_i32, %c0_i32_0 : i32, i32
  }
  func.func @transform_10(%arg0: i32) -> (i32, i32) {
    %c0_i32 = arith.constant 0 : i32
    %c0_i32_0 = arith.constant 0 : i32
    return %arg0, %c0_i32 : i32, i32
  }
}

</mosaic_0001>

<bundles_post_ra>
// kernel: tpu_custom_call.1
= control target key start
LH: loop header
LB: loop body
LE: loop exit
PB: predicated region body
PF: predicated region fallthrough
CT: control target
= control target key end

     0   :  { %v3169_v1 = vmov 0.0   ;;  %vm3170_vm0 = vmmov 0   ;;  %s3949_s0 = inlined_call_operand.vmem [shape: f32[8,32], index: 0, kind: input, shape index: {}]   ;;  %s3950_s1 = inlined_call_operand.vmem [shape: f32[8,8], index: 1, kind: input, shape index: {}]   ;;  %s3951_s2 = inlined_call_operand.vmem [shape: f32[8,32,8], index: 2, kind: input, shape index: {}]   ;;  %s3952_s3 = inlined_call_operand.vmem [shape: f32[32,64], index: 3, kind: input, shape index: {}]   ;;  %s3953_s4 = inlined_call_operand.vmem [shape: f32[32,40], index: 4, kind: input, shape index: {}]   ;;  %s3954_s5 = inlined_call_operand.vmem [shape: f32[8,32], index: 5, kind: input, shape index: {}]   ;;  %s3955_s6 = inlined_call_operand.vmem [shape: f32[32,32], index: 6, kind: input, shape index: {}]   ;;  %s3956_s7 = inlined_call_operand.vmem [shape: f32[32,32], index: 7, kind: input, shape index: {}]   ;;  %s3957_s8 = inlined_call_operand.vmem [shape: f32[32,32], index: 8, kind: input, shape index: {}]   ;;  %s3958_s9 = inlined_call_operand.vmem [shape: f32[12,32], index: 9, kind: input, shape index: {}]   ;;  %s3959_s10 = inlined_call_operand.hbm [shape: f32[8,32], index: 10, kind: output, shape index: {}]  }
   0x1   :  { %v75_v0 = vld [vmem:[%s3952_s3 + $0x18] sm:$0xff]  ;;  %2852 = vmatprep.subr.mxu0 %v3169_v1  ;;  %v74_v2 = vld [vmem:[%s3952_s3 + $0x10] sm:$0xff]  ;;  %2860 = vmatprep.mubr.msk.f32.mxu0 %vm3170_vm0, %v3169_v1 }
   0x2   :  { %2853 = vmatpush3.msra.mxu0 %v75_v0 }
   0x3   :  { %15 = vsyncpa [#allocation3], 0  ;;  %2854 = vmatprep.subr.mxu0 %v3169_v1  ;;  %v73_v3 = vld [vmem:[%s3952_s3 + $0x8] sm:$0xff]  ;;  %v72_v4 = vld [vmem:[%s3952_s3] sm:$0xff]  ;;  %vm76_vm1 = vcmask 261120   ;;  %v150_v13 = vlaneseq  ;;  %s3172_s13 = smov 32  }
   0x4   :  { %2855 = vmatpush3.msra.mxu0 %v74_v2  ;;  %v36_v5 = vld [vmem:[%s3949_s0] sm:$0xff]  ;;  %v265_v6 = vld [vmem:[%s3953_s4 + $0x18] sm:$0xff]  ;;  %v264_v7 = vld [vmem:[%s3953_s4 + $0x10] sm:$0xff]  ;;  %v3171_v15 = vmov 1966171168   ;;  %vm1121_vm2 = vcmask 322816  }
   0x5   :  { %2856 = vmatprep.subr.mxu0 %v3169_v1  ;;  %2863 = vmatprep.subr.mxu1 %v265_v6  ;;  %v263_v8 = vld [vmem:[%s3953_s4 + $0x8] sm:$0xff]  ;;  %v262_v9 = vld [vmem:[%s3953_s4] sm:$0xff]  ;;  %v3271_v10 = vld [vmem:[%s3951_s2 + $0x18] sm:$0xff]  ;;  %v3289_v14 = vshrl.u32 %v150_v13, 7  ;;  %v167_v16 = vunpack.c.l.s4 %v3171_v15  ;;  %vm1202_vm3 = vcmask 60416   ;;  %vm1270_vm4 = vcmask 64512  }
   0x6   :  { %2857 = vmatpush3.msra.mxu0 %v73_v3  ;;  %2864 = vmatpush3.msra.mxu1 %v265_v6  ;;  %v3276_v11 = vld [vmem:[%s3951_s2 + $0x10] sm:$0xff]  ;;  %v3283_v12 = vld [vmem:[%s3951_s2 + $0x8] sm:$0xff]  ;;  %v3297_v18 = vld [vmem:[%s3958_s9] sm:$0xff]  ;;  %vm2199_vm5 = vcmask 257024   ;;  %vm2305_vm6 = vcmask 1041409   ;;  %vm2308_vm7 = vcmask 1042434  }
   0x7   :  { %2858 = vmatprep.subr.mxu0 %v3169_v1  ;;  %2865 = vmatprep.subr.mxu1 %v264_v7  ;;  %v3292_v17 = vsub.s32 0, %v3289_v14  ;;  %v168_v19 = vunpack.c.0.s8 %v167_v16  ;;  %v71_v37 = vld [vmem:[%s3958_s9 + $0x8] sm:$0xf]  ;;  %v3328_v57 = vld [vmem:[%s3951_s2 + $0x38] sm:$0xff]  ;;  %v3334_v59 = vld [vmem:[%s3951_s2 + $0x30] sm:$0xff]  ;;  %vm2311_vm8 = vcmask 1043459  }
   0x8   :  { %2859 = vmatpush3.msra.mxu0 %v72_v4  ;;  %2866 = vmatpush3.msra.mxu1 %v264_v7  ;;  %v3347_v61 = vld [vmem:[%s3951_s2] sm:$0xff]  ;;  %v3352_v62 = vld [vmem:[%s3951_s2 + $0x28] sm:$0xff]  ;;  %v3370_v2 = vld [vmem:[%s3951_s2 + $0x58] sm:$0xff]  ;;  %vm2314_vm9 = vcmask 1044484   ;;  %vm2317_vm10 = vcmask 1045509   ;;  %vm2320_vm11 = vcmask 1046534  }
   0x9   :  { %2861 = vmatmul.mubr.msk.f32.vlgmr.msra.gmra.mxu0 %vm76_vm1, %v36_v5  ;;  %2877 = vmatprep.subr.mxu0 %v3169_v1  ;;  %v153_v20 = vrot.slane %v3297_v18, %v3292_v17  ;;  %v3302_v21 = vsub.s32 %v168_v19, %v3289_v14  ;;  %v3361_v63 = vld [vmem:[%s3951_s2 + $0x20] sm:$0xff]  ;;  %v3383_v5 = vld [vmem:[%s3951_s2 + $0x50] sm:$0xff]  ;;  %v3388_v6 = vld [vmem:[%s3951_s2 + $0x78] sm:$0xff]  ;;  %vm2323_vm12 = vcmask 1047559  }
   0xa   :  { %2885 = vmatprep.mubr.msk.f32.mxu0 %vm3170_vm0, %v3169_v1  ;;  %2867 = vmatprep.subr.mxu1 %v263_v8  ;;  %v3399_v7 = vld [vmem:[%s3951_s2 + $0x48] sm:$0xff]  ;;  %v3427_v15 = vld [vmem:[%s3951_s2 + $0x60] sm:$0xff]  ;;  %v3434_v16 = vld [vmem:[%s3951_s2 + $0x98] sm:$0xff] }
   0xb   :  { %2868 = vmatpush3.msra.mxu1 %v263_v8  ;;  %2878 = vmatpush3.msra.mxu0 %v3271_v10  ;;  %v3404_v8 = vld [vmem:[%s3951_s2 + $0x70] sm:$0xff]  ;;  %v3418_v13 = vld [vmem:[%s3951_s2 + $0x68] sm:$0xff] }
   0xc   :  { %2869 = vmatprep.subr.mxu1 %v262_v9  ;;  %2879 = vmatprep.subr.mxu0 %v3169_v1 }
   0xd   :  { %2870 = vmatpush3.msra.mxu1 %v262_v9  ;;  %2880 = vmatpush3.msra.mxu0 %v3276_v11  ;;  %v3413_v9 = vld [vmem:[%s3951_s2 + $0x40] sm:$0xff] }
   0xe   :  { %2888 = vmatprep.subr.mxu1 %v3169_v1  ;;  %2881 = vmatprep.subr.mxu0 %v3169_v1 }
   0xf   :  { %2882 = vmatpush3.msra.mxu0 %v3283_v12 }
  0x10   :  { %2883 = vmatprep.subr.mxu0 %v3169_v1 }
  0x11   :  { %2884 = vmatpush3.msra.mxu0 %v3347_v61 }
  0x12   :  { %2899 = vmatprep.subr.mxu0 %v3169_v1 }
  0xc9   :  { %v3304_v22 = vpop.f32.mrf.mxu0 }
  0xca   :  { %v154_v23 = vadd.f32 %v153_v20, %v3304_v22  ;;  %v3448_v20 = vld [vmem:[%s3951_s2 + $0x90] sm:$0xff] }
  0xcb   :  { %v2862_v24 = vpop.f32.mrf.mxu0 }
  0xcc   :  { %v165_v25 = vcombine.high %v154_v23, %v154_v23  ;;  %v172_v26 = vrot.slane %v154_v23, %v3302_v21  ;;  %v3456_v23 = vld [vmem:[%s3951_s2 + $0xb8] sm:$0xff]  ;;  %v3464_v24 = vld [vmem:[%s3951_s2 + $0x88] sm:$0xff] }
  0xce   :  { %v179_v27 = vrot.slane %v165_v25, %v3302_v21  ;;  %v180_v28 = vcombine.high %v172_v26, %v172_v26  ;;  %v188_v29 = vrot.slane %v172_v26, %v3302_v21  ;;  %v3473_v26 = vld [vmem:[%s3951_s2 + $0xb0] sm:$0xff] }
  0xd0   :  { %v181_v30 = vcombine.high %v179_v27, %v179_v27  ;;  %v195_v31 = vrot.slane %v179_v27, %v3302_v21  ;;  %v210_v32 = vcombine.high %v188_v29, %v188_v29  ;;  %v202_v33 = vrot.slane %v180_v28, %v3302_v21  ;;  %v3480_v27 = vld [vmem:[%s3951_s2 + $0x80] sm:$0xff]  ;;  %v3487_v28 = vld [vmem:[%s3951_s2 + $0xa8] sm:$0xff] }
  0xd1   :  { %v217_v34 = vrot.slane %v188_v29, %v3292_v17 }
  0xd2   :  { %v209_v35 = vrot.slane %v181_v30, %v3302_v21  ;;  %v233_v36 = vrot.slane %v195_v31, %v3292_v17  ;;  %v211_v38 = vcombine.high %v195_v31, %v195_v31  ;;  %v225_v39 = vrot.slane %v210_v32, %v3292_v17  ;;  %v3498_v30 = vld [vmem:[%s3951_s2 + $0xa0] sm:$0xff]  ;;  %v3506_v31 = vld [vmem:[%s3951_s2 + $0xd8] sm:$0xff] }
  0xd3   :  { %v212_v40 = vcombine.high %v202_v33, %v202_v33  ;;  %v221_v41 = vrot.slane %v202_v33, %v3292_v17  ;;  %v254_v44 = vmul.f32 %v217_v34, %v71_v37  ;;  %v3520_v33 = vld [vmem:[%s3951_s2 + $0xd0] sm:$0xff]  ;;  %v3528_v34 = vld [vmem:[%s3951_s2 + $0xf8] sm:$0xff] }
  0xd4   :  { %v213_v42 = vcombine.high %v209_v35, %v209_v35  ;;  %v237_v43 = vrot.slane %v209_v35, %v3292_v17  ;;  %v258_v47 = vmul.f32 %v233_v36, %v71_v37  ;;  %v256_v51 = vmul.f32 %v225_v39, %v71_v37  ;;  %v3536_v35 = vld [vmem:[%s3951_s2 + $0xc8] sm:$0xff]  ;;  %v3543_v36 = vld [vmem:[%s3951_s2 + $0xf0] sm:$0xff]  ;;  %v3566_v39 = vld [vmem:[%s3951_s2 + $0xe0] sm:$0xff] }
  0xd5   :  { %v255_v45 = vmul.f32 %v221_v41, %v71_v37  ;;  %v229_v46 = vrot.slane %v212_v40, %v3292_v17  ;;  %v241_v53 = vrot.slane %v211_v38, %v3292_v17  ;;  %v3557_v38 = vld [vmem:[%s3951_s2 + $0xe8] sm:$0xff]  ;;  %v37_v41 = vld [vmem:[%s3950_s1] sm:$0xff]  ;;  %s3173_s1 = smov 96  }
  0xd6   :  { %v259_v48 = vmul.f32 %v237_v43, %v71_v37  ;;  %v245_v49 = vrot.slane %v213_v42, %v3292_v17  ;;  %v1015_v42 = vrot.slane %v37_v41, %v3302_v21 }
  0xd7   :  { %v274_v50 = vcombine.low %v254_v44, %v255_v45  ;;  %v257_v52 = vmul.f32 %v229_v46, %v71_v37  ;;  %v260_v58 = vmul.f32 %v241_v53, %v71_v37  ;;  %v1008_v53 = vcombine.high %v37_v41, %v37_v41 }
  0xd8   :  { %v276_v54 = vcombine.low %v258_v47, %v259_v48  ;;  %v261_v56 = vmul.f32 %v245_v49, %v71_v37  ;;  %v3550_v37 = vld [vmem:[%s3951_s2 + $0xc0] sm:$0xff]  ;;  %v1031_v43 = vrot.slane %v1015_v42, %v3302_v21  ;;  %v1023_v44 = vcombine.high %v1015_v42, %v1015_v42 }
  0xd9   :  { %2871 = vmatprep.mubr.msk.f32.mxu1 %vm76_vm1, %v274_v50  ;;  %v275_v55 = vcombine.low %v256_v51, %v257_v52 }
  0xda   :  { %v277_v60 = vcombine.low %v260_v58, %v261_v56  ;;  %v1060_v45 = vrot.slane %v1031_v43, %v3292_v17  ;;  %v1045_v46 = vrot.slane %v1023_v44, %v3302_v21  ;;  %v1053_v52 = vcombine.high %v1031_v43, %v1031_v43 }
  0xdb   :  { %2872 = vmatmul.mubr.msk.f32.vlgmr.msra.gmra.mxu1 %vm76_vm1, %v275_v55 }
  0xdc   :  { %2874 = vmatprep.mubr.msk.f32.mxu1 %vm76_vm1, %v276_v54  ;;  %2889 = vmatpush3.msra.mxu1 %v3328_v57  ;;  %v1064_v47 = vrot.slane %v1045_v46, %v3292_v17  ;;  %v1055_v55 = vcombine.high %v1045_v46, %v1045_v46  ;;  %v1068_v56 = vrot.slane %v1053_v52, %v3292_v17 }
  0xdd   :  { %2890 = vmatprep.subr.mxu1 %v3169_v1  ;;  %1089 = vrot.lane.b32.xlu1 %v1060_v45, %s3172_s13 }
  0xde   :  { %2891 = vmatpush3.msra.mxu1 %v3334_v59  ;;  %v1072_v44 = vrot.slane %v1055_v55, %v3292_v17 }
  0xdf   :  { %2875 = vmatmul.mubr.msk.f32.gmra.mxu1 %vm76_vm1, %v277_v60  ;;  %2892 = vmatprep.subr.mxu1 %v3169_v1  ;;  %v1022_v60 = vrot.slane %v1008_v53, %v3302_v21 }
  0xe0   :  { %2896 = vmatprep.mubr.msk.f32.mxu1 %vm3170_vm0, %v3169_v1  ;;  %2893 = vmatpush3.msra.mxu1 %v3352_v62 }
  0xe1   :  { %2894 = vmatprep.subr.mxu1 %v3169_v1  ;;  %1091 = vrot.lane.b32.xlu1 %v1064_v47, %s3172_s13  ;;  %v1024_v43 = vcombine.high %v1022_v60, %v1022_v60  ;;  %v1038_v41 = vrot.slane %v1022_v60, %v3302_v21 }
  0xe2   :  { %2895 = vmatpush3.msra.mxu1 %v3361_v63 }
  0xe3   :  { %2910 = vmatprep.subr.mxu1 %v3169_v1  ;;  %v1052_v47 = vrot.slane %v1024_v43, %v3302_v21 }
  0xe5   :  { %v1080_v52 = vrot.slane %v1052_v47, %v3292_v17  ;;  %v1056_v21 = vcombine.high %v1052_v47, %v1052_v47 }
  0xe7   :  { %v1088_v60 = vrot.slane %v1056_v21, %v3292_v17 }
 0x19b   :  { %v3365_v0 = vpop.f32.mrf.mxu1 }
 0x19c   :  { %v3441_v19 = vcombine.high %v3365_v0, %v3365_v0 }
 0x19d   :  { %v3372_v3 = vpop.f32.mrf.mxu1 }
 0x19e   :  { %v3376_v4 = vcombine.high %v3372_v3, %v3372_v3  ;;  %2886 = vmatmul.mubr.msk.f32.vlgmr.msra.gmra.mxu0 %vm76_vm1, %v3372_v3 }
 0x19f   :  { %2900 = vmatpush3.msra.mxu0 %v3370_v2  ;;  %2907 = vmatprep.mubr.msk.f32.mxu0 %vm3170_vm0, %v3169_v1  ;;  %v3466_v25 = vpop.f32.mrf.mxu1 }
 0x1a0   :  { %2901 = vmatprep.subr.mxu0 %v3169_v1  ;;  %2897 = vmatmul.mubr.msk.f32.vlgmr.msra.gmra.mxu1 %vm76_vm1, %v3376_v4  ;;  %v3573_v40 = vcombine.high %v3466_v25, %v3466_v25 }
 0x1a1   :  { %2902 = vmatpush3.msra.mxu0 %v3383_v5  ;;  %2911 = vmatpush3.msra.mxu1 %v3388_v6  ;;  %v3491_v29 = vpop.f32.mrf.mxu1 }
 0x1a2   :  { %2903 = vmatprep.subr.mxu0 %v3169_v1  ;;  %2912 = vmatprep.subr.mxu1 %v3169_v1  ;;  %v3513_v32 = vcombine.high %v3491_v29, %v3491_v29 }
 0x1a3   :  { %2904 = vmatpush3.msra.mxu0 %v3399_v7  ;;  %2913 = vmatpush3.msra.mxu1 %v3404_v8 }
 0x1a4   :  { %2905 = vmatprep.subr.mxu0 %v3169_v1  ;;  %2914 = vmatprep.subr.mxu1 %v3169_v1 }
 0x1a5   :  { %2906 = vmatpush3.msra.mxu0 %v3413_v9  ;;  %2915 = vmatpush3.msra.mxu1 %v3418_v13 }
 0x1a6   :  { %2908 = vmatmul.mubr.msk.f32.vlgmr.msra.gmra.mxu0 %vm76_vm1, %v3365_v0  ;;  %2916 = vmatprep.subr.mxu1 %v3169_v1 }
 0x1a7   :  { %2921 = vmatprep.subr.mxu0 %v3169_v1  ;;  %2917 = vmatpush3.msra.mxu1 %v3427_v15 }
 0x1a8   :  { %2918 = vmatprep.mubr.msk.f32.mxu1 %vm3170_vm0, %v3169_v1  ;;  %2922 = vmatpush3.msra.mxu0 %v3434_v16 }
 0x1a9   :  { %2919 = vmatmul.mubr.msk.f32.vlgmr.msra.gmra.mxu1 %vm76_vm1, %v3441_v19  ;;  %2923 = vmatprep.subr.mxu0 %v3169_v1 }
 0x1aa   :  { %2932 = vmatprep.subr.mxu1 %v3169_v1  ;;  %2924 = vmatpush3.msra.mxu0 %v3448_v20 }
 0x1ab   :  { %2933 = vmatpush3.msra.mxu1 %v3456_v23  ;;  %2925 = vmatprep.subr.mxu0 %v3169_v1 }
 0x1ac   :  { %2934 = vmatprep.subr.mxu1 %v3169_v1  ;;  %2926 = vmatpush3.msra.mxu0 %v3464_v24 }
 0x1ad   :  { %2935 = vmatpush3.msra.mxu1 %v3473_v26  ;;  %2927 = vmatprep.subr.mxu0 %v3169_v1 }
 0x1ae   :  { %2936 = vmatprep.subr.mxu1 %v3169_v1  ;;  %2928 = vmatpush3.msra.mxu0 %v3480_v27 }
 0x1af   :  { %2929 = vmatprep.mubr.msk.f32.mxu0 %vm3170_vm0, %v3169_v1  ;;  %2937 = vmatpush3.msra.mxu1 %v3487_v28 }
 0x1b0   :  { %2930 = vmatmul.mubr.msk.f32.vlgmr.msra.gmra.mxu0 %vm76_vm1, %v3491_v29  ;;  %2938 = vmatprep.subr.mxu1 %v3169_v1 }
 0x1b1   :  { %2943 = vmatprep.subr.mxu0 %v3169_v1  ;;  %2939 = vmatpush3.msra.mxu1 %v3498_v30 }
 0x1b2   :  { %2940 = vmatprep.mubr.msk.f32.mxu1 %vm3170_vm0, %v3169_v1  ;;  %2944 = vmatpush3.msra.mxu0 %v3506_v31 }
 0x1b3   :  { %2941 = vmatmul.mubr.msk.f32.vlgmr.msra.gmra.mxu1 %vm76_vm1, %v3513_v32  ;;  %2945 = vmatprep.subr.mxu0 %v3169_v1 }
 0x1b4   :  { %2954 = vmatprep.subr.mxu1 %v3169_v1  ;;  %2946 = vmatpush3.msra.mxu0 %v3520_v33 }
 0x1b5   :  { %2955 = vmatpush3.msra.mxu1 %v3528_v34  ;;  %2947 = vmatprep.subr.mxu0 %v3169_v1 }
 0x1b6   :  { %2956 = vmatprep.subr.mxu1 %v3169_v1  ;;  %2948 = vmatpush3.msra.mxu0 %v3536_v35 }
 0x1b7   :  { %2957 = vmatpush3.msra.mxu1 %v3543_v36  ;;  %2949 = vmatprep.subr.mxu0 %v3169_v1 }
 0x1b8   :  { %2958 = vmatprep.subr.mxu1 %v3169_v1  ;;  %2950 = vmatpush3.msra.mxu0 %v3550_v37 }
 0x1b9   :  { %2951 = vmatprep.mubr.msk.f32.mxu0 %vm3170_vm0, %v3169_v1  ;;  %2959 = vmatpush3.msra.mxu1 %v3557_v38 }
 0x1ba   :  { %2952 = vmatmul.mubr.msk.f32.vlgmr.msra.gmra.mxu0 %vm76_vm1, %v3466_v25  ;;  %2960 = vmatprep.subr.mxu1 %v3169_v1 }
 0x1bb   :  { %2961 = vmatpush3.msra.mxu1 %v3566_v39  ;;  %2962 = vmatprep.mubr.msk.f32.mxu1 %vm3170_vm0, %v3169_v1 }
 0x1bc   :  { %2963 = vmatmul.mubr.msk.f32.vlgmr.msra.gmra.mxu1 %vm76_vm1, %v3573_v40  ;;  %2965 = vmatprep.subr.mxu0 %v3169_v1 }
 0x1bd   :  { %2976 = vmatprep.subr.mxu1 %v3169_v1  ;;  %2973 = vmatprep.mubr.msk.f32.mxu0 %vm3170_vm0, %v3169_v1 }
 0x1be   :  { %2984 = vmatprep.mubr.msk.f32.mxu1 %vm3170_vm0, %v3169_v1  ;;  %2966 = vmatpush3.xpose.msk.msra.mxu0 %vm1270_vm4, %v3271_v10 }
 0x1bf   :  { %2977 = vmatpush3.xpose.msk.msra.mxu1 %vm1270_vm4, %v3328_v57  ;;  %2967 = vmatprep.subr.mxu0 %v3169_v1 }
 0x1c0   :  { %2978 = vmatprep.subr.mxu1 %v3169_v1 }
 0x1c2   :  { %2968 = vmatpush3.xpose.msk.msra.mxu0 %vm1270_vm4, %v3276_v11 }
 0x1c3   :  { %2979 = vmatpush3.xpose.msk.msra.mxu1 %vm1270_vm4, %v3334_v59  ;;  %2969 = vmatprep.subr.mxu0 %v3169_v1 }
 0x1c4   :  { %2980 = vmatprep.subr.mxu1 %v3169_v1 }
 0x1c6   :  { %2970 = vmatpush3.xpose.msk.msra.mxu0 %vm1270_vm4, %v3283_v12 }
 0x1c7   :  { %2981 = vmatpush3.xpose.msk.msra.mxu1 %vm1270_vm4, %v3352_v62  ;;  %2971 = vmatprep.subr.mxu0 %v3169_v1 }
 0x1c8   :  { %2982 = vmatprep.subr.mxu1 %v3169_v1 }
 0x1ca   :  { %2972 = vmatpush3.xpose.msk.msra.mxu0 %vm1270_vm4, %v3347_v61 }
 0x1cb   :  { %2983 = vmatpush3.xpose.msk.msra.mxu1 %vm1270_vm4, %v3361_v63  ;;  %2987 = vmatprep.subr.mxu0 %v3169_v1 }
 0x1cc   :  { %2998 = vmatprep.subr.mxu1 %v3169_v1 }
 0x25e   :  { %v451_v48 = vpop.f32.mrf.mxu0 }
 0x25f   :  { %967 = vrot.lane.b32.xlu0 %v451_v48, %s3172_s13  ;;  %v1076_v48 = vrot.slane %v1038_v41, %v3292_v17 }
 0x260   :  { %v2887_v49 = vpop.f32.mrf.mxu0  ;;  %v523_v50 = vpop.f32.mrf.mxu1 }
 0x261   :  { %v1054_v49 = vcombine.high %v1038_v41, %v1038_v41 }
 0x262   :  { %v2898_v51 = vpop.f32.mrf.mxu1 }
 0x263   :  { %969 = vrot.lane.b32.xlu0 %v523_v50, %s3172_s13 }
 0x266   :  { %v595_v54 = vpop.f32.mrf.mxu0 }
 0x267   :  { %971 = vrot.lane.b32.xlu0 %v595_v54, %s3172_s13  ;;  %v1084_v54 = vrot.slane %v1054_v49, %v3292_v17 }
 0x268   :  { %v2909_v58 = vpop.f32.mrf.mxu0 }
 0x269   :  { %v667_v42 = vpop.f32.mrf.mxu1 }
 0x26a   :  { %973 = vrot.lane.b32.xlu1 %v667_v42, %s3172_s13 }
 0x26b   :  { %v2920_v45 = vpop.f32.mrf.mxu1  ;;  %1093 = vrot.lane.b32.xlu0 %v1068_v56, %s3172_s13 }
 0x26e   :  { %1095 = vrot.lane.b32.xlu1 %v1072_v44, %s3172_s13  ;;  %v1090_v44 = vpop.permute.xlu1 %1089 }
 0x270   :  { %v739_v46 = vpop.f32.mrf.mxu0 }
 0x271   :  { %975 = vrot.lane.b32.xlu0 %v739_v46, %s3172_s13 }
 0x272   :  { %v2931_v50 = vpop.f32.mrf.mxu0  ;;  %v1092_v49 = vpop.permute.xlu1 %1091 }
 0x273   :  { %v811_v51 = vpop.f32.mrf.mxu1 }
 0x274   :  { %977 = vrot.lane.b32.xlu1 %v811_v51, %s3172_s13 }
 0x275   :  { %v2942_v53 = vpop.f32.mrf.mxu1  ;;  %1097 = vrot.lane.b32.xlu0 %v1076_v48, %s3172_s13 }
 0x278   :  { %1099 = vrot.lane.b32.xlu1 %v1080_v52, %s3172_s13 }
 0x279   :  { %1101 = vrot.lane.b32.xlu0 %v1084_v54, %s3172_s13 }
 0x27a   :  { %v883_v55 = vpop.f32.mrf.mxu0 }
 0x27c   :  { %v955_v56 = vpop.f32.mrf.mxu1  ;;  %v2953_v58 = vpop.f32.mrf.mxu0 }
 0x27d   :  { %981 = vrot.lane.b32.xlu1 %v955_v56, %s3172_s13  ;;  %979 = vrot.lane.b32.xlu0 %v883_v55, %s3172_s13 }
 0x27e   :  { %v2964_v42 = vpop.f32.mrf.mxu1 }
 0x281   :  { %1103 = vrot.lane.b32.xlu1 %v1088_v60, %s3172_s13 }
 0x2d1   :  { %v968_v45 = vpop.permute.xlu0 %967 }
 0x2d2   :  { %v991_v43 = vadd.f32 %v968_v45, %v3372_v3 }
 0x2d4   :  { %v999_v41 = vmul.f32 0.35355338, %v991_v43 }
 0x2d5   :  { %v970_v46 = vpop.permute.xlu0 %969 }
 0x2d6   :  { %v1113_v47 = vadd.f32 %v1090_v44, %v999_v41  ;;  %v992_v48 = vadd.f32 %v970_v46, %v3376_v4 }
 0x2d8   :  { %v1000_v50 = vmul.f32 0.35355338, %v992_v48  ;;  %v1122_v51 = vsel %vm1121_vm2, %v1113_v47, -inf }
 0x2d9   :  { %v972_v52 = vpop.permute.xlu0 %971  ;;  %1123 = vmax.xlane.f32.xlu0 %v1122_v51 }
 0x2da   :  { %v1114_v17 = vadd.f32 %v1092_v49, %v1000_v50  ;;  %v993_v53 = vadd.f32 %v3365_v0, %v972_v52 }
 0x2dc   :  { %v1001_v54 = vmul.f32 0.35355338, %v993_v53  ;;  %v974_v21 = vpop.permute.xlu1 %973  ;;  %v1125_v55 = vsel %vm1121_vm2, %v1114_v17, -inf }
 0x2dd   :  { %v994_v3 = vadd.f32 %v974_v21, %v3441_v19  ;;  %1126 = vmax.xlane.f32.xlu1 %v1125_v55  ;;  %v1094_v56 = vpop.permute.xlu0 %1093 }
 0x2de   :  { %v1115_v58 = vadd.f32 %v1094_v56, %v1001_v54 }
 0x2df   :  { %v1002_v60 = vmul.f32 0.35355338, %v994_v3 }
 0x2e0   :  { %v1096_v4 = vpop.permute.xlu1 %1095  ;;  %v1128_v42 = vsel %vm1121_vm2, %v1115_v58, -inf }
 0x2e1   :  { %v1116_v44 = vadd.f32 %v1096_v4, %v1002_v60  ;;  %1129 = vmax.xlane.f32.xlu0 %v1128_v42 }
 0x2e3   :  { %v976_v45 = vpop.permute.xlu0 %975  ;;  %v1131_v0 = vsel %vm1121_vm2, %v1116_v44, -inf }
 0x2e4   :  { %v995_v43 = vadd.f32 %v976_v45, %v3491_v29 }
 0x2e5   :  { %1132 = vmax.xlane.f32.xlu0 %v1131_v0 }
 0x2e6   :  { %v1003_v41 = vmul.f32 0.35355338, %v995_v43  ;;  %v978_v46 = vpop.permute.xlu1 %977 }
 0x2e7   :  { %v996_v48 = vadd.f32 %v978_v46, %v3513_v32  ;;  %v1098_v19 = vpop.permute.xlu0 %1097 }
 0x2e8   :  { %v1117_v49 = vadd.f32 %v1098_v19, %v1003_v41 }
 0x2e9   :  { %v1004_v50 = vmul.f32 0.35355338, %v996_v48 }
 0x2ea   :  { %v1100_v51 = vpop.permute.xlu1 %1099  ;;  %v1134_v52 = vsel %vm1121_vm2, %v1117_v49, -inf }
 0x2eb   :  { %v1118_v53 = vadd.f32 %v1100_v51, %v1004_v50  ;;  %1135 = vmax.xlane.f32.xlu1 %v1134_v52  ;;  %v1102_v54 = vpop.permute.xlu0 %1101 }
 0x2ed   :  { %v1137_v21 = vsel %vm1121_vm2, %v1118_v53, -inf }
 0x2ee   :  { %1138 = vmax.xlane.f32.xlu0 %v1137_v21 }
 0x2ef   :  { %v982_v29 = vpop.permute.xlu1 %981  ;;  %v980_v55 = vpop.permute.xlu0 %979 }
 0x2f0   :  { %v998_v3 = vadd.f32 %v982_v29, %v3573_v40  ;;  %v997_v56 = vadd.f32 %v3466_v25, %v980_v55 }
 0x2f2   :  { %v1006_v60 = vmul.f32 0.35355338, %v998_v3  ;;  %v1005_v32 = vmul.f32 0.35355338, %v997_v56 }
 0x2f3   :  { %v1104_v4 = vpop.permute.xlu1 %1103 }
 0x2f4   :  { %v1120_v42 = vadd.f32 %v1104_v4, %v1006_v60  ;;  %v1119_v45 = vadd.f32 %v1102_v54, %v1005_v32 }
 0x2f6   :  { %v1143_v43 = vsel %vm1121_vm2, %v1120_v42, -inf  ;;  %v1140_v0 = vsel %vm1121_vm2, %v1119_v45, -inf }
 0x2f7   :  { %1144 = vmax.xlane.f32.xlu0 %v1143_v43  ;;  %1141 = vmax.xlane.f32.xlu1 %v1140_v0 }
 0x362   :  { %v1124_v41 = vpop.xlane.xlu0 %1123 }
 0x363   :  { %v1146_v46 = vsub.f32 %v1113_v47, %v1124_v41 }
 0x365   :  { %v1154_v48 = vmul.f32 1.442695, %v1146_v46 }
 0x366   :  { %v1127_v19 = vpop.xlane.xlu1 %1126 }
 0x367   :  { %3104 = vpow2.f32 %v1154_v48  ;;  %v1147_v50 = vsub.f32 %v1114_v17, %v1127_v19 }
 0x369   :  { %v1156_v40 = vmul.f32 1.442695, %v1147_v50 }
 0x36a   :  { %v1130_v51 = vpop.xlane.xlu0 %1129 }
 0x36b   :  { %3106 = vpow2.f32 %v1156_v40  ;;  %v1148_v25 = vsub.f32 %v1115_v58, %v1130_v51 }
 0x36d   :  { %v1158_v52 = vmul.f32 1.442695, %v1148_v25 }
 0x36e   :  { %v1133_v21 = vpop.xlane.xlu0 %1132 }
 0x36f   :  { %3108 = vpow2.f32 %v1158_v52  ;;  %v1149_v54 = vsub.f32 %v1116_v44, %v1133_v21 }
 0x371   :  { %v1160_v29 = vmul.f32 1.442695, %v1149_v54 }
 0x373   :  { %3110 = vpow2.f32 %v1160_v29 }
 0x374   :  { %v3638_v55 = vpop.eup %3104  ;;  %v1136_v3 = vpop.xlane.xlu1 %1135 }
 0x375   :  { %v1150_v56 = vsub.f32 %v1117_v49, %v1136_v3  ;;  %1178 = vrot.lane.b32.xlu1 %v3638_v55, %s3173_s1 }
 0x377   :  { %v1162_v47 = vmul.f32 1.442695, %v1150_v56  ;;  %v1139_v17 = vpop.xlane.xlu0 %1138 }
 0x378   :  { %v3642_v60 = vpop.eup %3106  ;;  %v1151_v32 = vsub.f32 %v1118_v53, %v1139_v17 }
 0x379   :  { %3112 = vpow2.f32 %v1162_v47  ;;  %1180 = vrot.lane.b32.xlu0 %v3642_v60, %s3173_s1 }
 0x37a   :  { %v1164_v58 = vmul.f32 1.442695, %v1151_v32 }
 0x37c   :  { %v3646_v44 = vpop.eup %3108  ;;  %3114 = vpow2.f32 %v1164_v58 }
 0x37d   :  { %1182 = vrot.lane.b32.xlu1 %v3646_v44, %s3173_s1 }
 0x380   :  { %v3650_v49 = vpop.eup %3110  ;;  %v1145_v4 = vpop.xlane.xlu0 %1144 }
 0x381   :  { %v1142_v43 = vpop.xlane.xlu1 %1141  ;;  %v1153_v0 = vsub.f32 %v1120_v42, %v1145_v4  ;;  %1184 = vrot.lane.b32.xlu1 %v3650_v49, %s3173_s1 }
 0x382   :  { %v1152_v41 = vsub.f32 %v1119_v45, %v1142_v43 }
 0x383   :  { %v1168_v53 = vmul.f32 1.442695, %v1153_v0 }
 0x384   :  { %v1166_v46 = vmul.f32 1.442695, %v1152_v41 }
 0x385   :  { %3116 = vpow2.f32 %v1168_v53 }
 0x386   :  { %v3654_v48 = vpop.eup %3112  ;;  %3118 = vpow2.f32 %v1166_v46 }
 0x387   :  { %1186 = vrot.lane.b32.xlu0 %v3654_v48, %s3173_s1 }
 0x389   :  { %v3658_v19 = vpop.eup %3114 }
 0x38a   :  { %1188 = vrot.lane.b32.xlu1 %v3658_v19, %s3173_s1 }
 0x392   :  { %v3662_v50 = vpop.eup %3116 }
 0x393   :  { %v3664_v42 = vpop.eup %3118  ;;  %1192 = vrot.lane.b32.xlu1 %v3662_v50, %s3173_s1 }
 0x394   :  { %1190 = vrot.lane.b32.xlu0 %v3664_v42, %s3173_s1 }
 0x3e7   :  { %v1179_v45 = vpop.permute.xlu1 %1178 }
 0x3e8   :  { %v1203_v40 = vsel %vm1202_vm3, %v1179_v45, 0.0 }
 0x3e9   :  { %1204 = vadd.xlane.f32.xlu0 %v1203_v40 }
 0x3eb   :  { %v1181_v51 = vpop.permute.xlu0 %1180 }
 0x3ec   :  { %v1206_v25 = vsel %vm1202_vm3, %v1181_v51, 0.0 }
 0x3ed   :  { %1207 = vadd.xlane.f32.xlu1 %v1206_v25 }
 0x3ef   :  { %v1183_v52 = vpop.permute.xlu1 %1182 }
 0x3f0   :  { %v1209_v21 = vsel %vm1202_vm3, %v1183_v52, 0.0 }
 0x3f1   :  { %1210 = vadd.xlane.f32.xlu0 %v1209_v21 }
 0x3f3   :  { %v1185_v54 = vpop.permute.xlu1 %1184 }
 0x3f4   :  { %v1212_v29 = vsel %vm1202_vm3, %v1185_v54, 0.0 }
 0x3f5   :  { %1213 = vadd.xlane.f32.xlu0 %v1212_v29 }
 0x3f9   :  { %v1187_v3 = vpop.permute.xlu0 %1186 }
 0x3fa   :  { %v1215_v56 = vsel %vm1202_vm3, %v1187_v3, 0.0 }
 0x3fb   :  { %1216 = vadd.xlane.f32.xlu1 %v1215_v56 }
 0x3fc   :  { %v1189_v47 = vpop.permute.xlu1 %1188 }
 0x3fd   :  { %v1218_v17 = vsel %vm1202_vm3, %v1189_v47, 0.0 }
 0x3fe   :  { %1219 = vadd.xlane.f32.xlu0 %v1218_v17 }
 0x405   :  { %v1193_v32 = vpop.permute.xlu1 %1192 }
 0x406   :  { %v1224_v58 = vsel %vm1202_vm3, %v1193_v32, 0.0  ;;  %v1191_v4 = vpop.permute.xlu0 %1190 }
 0x407   :  { %1225 = vadd.xlane.f32.xlu0 %v1224_v58  ;;  %v1221_v43 = vsel %vm1202_vm3, %v1191_v4, 0.0 }
 0x408   :  { %1222 = vadd.xlane.f32.xlu1 %v1221_v43 }
 0x472   :  { %v1205_v10 = vpop.xlane.xlu0 %1204 }
 0x473   :  { %3120 = vrcp.f32 %v1205_v10 }
 0x476   :  { %v1208_v11 = vpop.xlane.xlu1 %1207 }
 0x477   :  { %3122 = vrcp.f32 %v1208_v11 }
 0x47a   :  { %v1211_v12 = vpop.xlane.xlu0 %1210 }
 0x47b   :  { %3124 = vrcp.f32 %v1211_v12 }
 0x47e   :  { %v1214_v57 = vpop.xlane.xlu0 %1213 }
 0x47f   :  { %3126 = vrcp.f32 %v1214_v57 }
 0x480   :  { %v3121_v59 = vpop.eup %3120 }
 0x481   :  { %v1235_v62 = vmul.f32 %v3121_v59, %v1205_v10 }
 0x483   :  { %v1243_v0 = vsub.f32 2.0, %v1235_v62 }
 0x484   :  { %v3123_v41 = vpop.eup %3122  ;;  %v1217_v61 = vpop.xlane.xlu1 %1216 }
 0x485   :  { %v1251_v53 = vmul.f32 %v3121_v59, %v1243_v0  ;;  %v1236_v46 = vmul.f32 %v3123_v41, %v1208_v11  ;;  %3128 = vrcp.f32 %v1217_v61 }
 0x487   :  { %v1244_v63 = vsub.f32 2.0, %v1236_v46  ;;  %v1220_v45 = vpop.xlane.xlu0 %1219  ;;  %v1259_v40 = vmul.f32 %v3638_v55, %v1251_v53 }
 0x488   :  { %v3125_v51 = vpop.eup %3124  ;;  %3130 = vrcp.f32 %v1220_v45 }
 0x489   :  { %v1252_v25 = vmul.f32 %v3123_v41, %v1244_v63  ;;  %v1237_v52 = vmul.f32 %v3125_v51, %v1211_v12  ;;  %1268 = vrot.lane.b32.xlu1 %v1259_v40, %s3173_s1 }
 0x48b   :  { %v1245_v21 = vsub.f32 2.0, %v1237_v52  ;;  %v1260_v54 = vmul.f32 %v3642_v60, %v1252_v25 }
 0x48c   :  { %v3127_v29 = vpop.eup %3126 }
 0x48d   :  { %v1253_v3 = vmul.f32 %v3125_v51, %v1245_v21  ;;  %v1238_v56 = vmul.f32 %v3127_v29, %v1214_v57  ;;  %1356 = vrot.lane.b32.xlu0 %v1260_v54, %s3173_s1  ;;  %v157_v21 = vsub.s32 1, %v3289_v14 }
 0x48f   :  { %v1246_v47 = vsub.f32 2.0, %v1238_v56  ;;  %v1261_v17 = vmul.f32 %v3646_v44, %v1253_v3 }
 0x490   :  { %v1226_v32 = vpop.xlane.xlu0 %1225 }
 0x491   :  { %v1254_v58 = vmul.f32 %v3127_v29, %v1246_v47  ;;  %3132 = vrcp.f32 %v1226_v32  ;;  %v1223_v55 = vpop.xlane.xlu1 %1222  ;;  %1443 = vrot.lane.b32.xlu1 %v1261_v17, %s3173_s1 }
 0x492   :  { %v3129_v4 = vpop.eup %3128  ;;  %3134 = vrcp.f32 %v1223_v55 }
 0x493   :  { %v1239_v43 = vmul.f32 %v3129_v4, %v1217_v61  ;;  %v1262_v10 = vmul.f32 %v3650_v49, %v1254_v58 }
 0x495   :  { %v3131_v60 = vpop.eup %3130  ;;  %v1247_v11 = vsub.f32 2.0, %v1239_v43  ;;  %1530 = vrot.lane.b32.xlu1 %v1262_v10, %s3173_s1 }
 0x496   :  { %v1240_v12 = vmul.f32 %v3131_v60, %v1220_v45 }
 0x497   :  { %v1255_v57 = vmul.f32 %v3129_v4, %v1247_v11 }
 0x498   :  { %v1248_v59 = vsub.f32 2.0, %v1240_v12 }
 0x499   :  { %v1263_v44 = vmul.f32 %v3654_v48, %v1255_v57  ;;  %v2075_v48 = vcombine.low %v1261_v17, %v1262_v10 }
 0x49a   :  { %v1256_v62 = vmul.f32 %v3131_v60, %v1248_v59 }
 0x49b   :  { %1617 = vrot.lane.b32.xlu0 %v1263_v44, %s3173_s1 }
 0x49c   :  { %v1264_v0 = vmul.f32 %v3658_v19, %v1256_v62  ;;  %v2074_v19 = vcombine.low %v1259_v40, %v1260_v54 }
 0x49e   :  { %v3133_v41 = vpop.eup %3132  ;;  %1704 = vrot.lane.b32.xlu1 %v1264_v0, %s3173_s1  ;;  %v2076_v3 = vcombine.low %v1263_v44, %v1264_v0 }
 0x49f   :  { %v3135_v61 = vpop.eup %3134  ;;  %v1242_v53 = vmul.f32 %v3133_v41, %v1226_v32 }
 0x4a0   :  { %v1241_v49 = vmul.f32 %v3135_v61, %v1223_v55 }
 0x4a1   :  { %v1250_v46 = vsub.f32 2.0, %v1242_v53 }
 0x4a2   :  { %v1249_v63 = vsub.f32 2.0, %v1241_v49 }
 0x4a3   :  { %v1258_v51 = vmul.f32 %v3133_v41, %v1250_v46 }
 0x4a4   :  { %v1257_v25 = vmul.f32 %v3135_v61, %v1249_v63 }
 0x4a5   :  { %v1266_v45 = vmul.f32 %v3662_v50, %v1258_v51  ;;  %v158_v50 = vrot.slane %v3297_v18, %v157_v21 }
 0x4a6   :  { %v1265_v52 = vmul.f32 %v3664_v42, %v1257_v25  ;;  %v3144_v25 = vld [vmem:[%s3958_s9 + $0x8] sm:$0xf] }
 0x4a7   :  { %1878 = vrot.lane.b32.xlu1 %v1266_v45, %s3173_s1 }
 0x4a8   :  { %1791 = vrot.lane.b32.xlu0 %v1265_v52, %s3173_s1  ;;  %v2077_v29 = vcombine.low %v1265_v52, %v1266_v45 }
 0x4ab   :  { %2080 = vrot.lane.b32.xlu1 %v2075_v48, %s3173_s1 }
 0x4ac   :  { %2078 = vrot.lane.b32.xlu0 %v2074_v19, %s3173_s1 }
 0x4af   :  { %2084 = vrot.lane.b32.xlu1 %v2077_v29, %s3173_s1 }
 0x4b0   :  { %2082 = vrot.lane.b32.xlu0 %v2076_v3, %s3173_s1 }
 0x4b4   :  { %160 = vrot.lane.b32.xlu0 %v158_v50, %s3172_s13 }
 0x4fb   :  { %v1269_v42 = vpop.permute.xlu1 %1268 }
 0x4fc   :  { %2974 = vmatmul.mubr.msk.f32.vlgmr.msra.gmra.mxu0 %vm1270_vm4, %v1269_v42 }
 0x4fd   :  { %2988 = vmatpush3.xpose.msk.msra.mxu0 %vm1270_vm4, %v3370_v2  ;;  %2995 = vmatprep.mubr.msk.f32.mxu0 %vm3170_vm0, %v3169_v1 }
 0x4fe   :  { %2989 = vmatprep.subr.mxu0 %v3169_v1 }
 0x4ff   :  { %v1357_v40 = vpop.permute.xlu0 %1356 }
 0x500   :  { %2985 = vmatmul.mubr.msk.f32.vlgmr.msra.gmra.mxu1 %vm1270_vm4, %v1357_v40 }
 0x501   :  { %2990 = vmatpush3.xpose.msk.msra.mxu0 %vm1270_vm4, %v3383_v5  ;;  %2999 = vmatpush3.xpose.msk.msra.mxu1 %vm1270_vm4, %v3388_v6 }
 0x502   :  { %2991 = vmatprep.subr.mxu0 %v3169_v1  ;;  %3000 = vmatprep.subr.mxu1 %v3169_v1 }
 0x503   :  { %3006 = vmatprep.mubr.msk.f32.mxu1 %vm3170_vm0, %v3169_v1  ;;  %v1444_v18 = vpop.permute.xlu1 %1443 }
 0x505   :  { %2992 = vmatpush3.xpose.msk.msra.mxu0 %vm1270_vm4, %v3399_v7  ;;  %3001 = vmatpush3.xpose.msk.msra.mxu1 %vm1270_vm4, %v3404_v8 }
 0x506   :  { %2993 = vmatprep.subr.mxu0 %v3169_v1  ;;  %3002 = vmatprep.subr.mxu1 %v3169_v1 }
 0x507   :  { %v1531_v2 = vpop.permute.xlu1 %1530 }
 0x509   :  { %2994 = vmatpush3.xpose.msk.msra.mxu0 %vm1270_vm4, %v3413_v9  ;;  %3003 = vmatpush3.xpose.msk.msra.mxu1 %vm1270_vm4, %v3418_v13 }
 0x50a   :  { %3004 = vmatprep.subr.mxu1 %v3169_v1  ;;  %3009 = vmatprep.subr.mxu0 %v3169_v1 }
 0x50c   :  { %2996 = vmatmul.mubr.msk.f32.vlgmr.msra.gmra.mxu0 %vm1270_vm4, %v1444_v18 }
 0x50d   :  { %3010 = vmatpush3.xpose.msk.msra.mxu0 %vm1270_vm4, %v3434_v16  ;;  %3005 = vmatpush3.xpose.msk.msra.mxu1 %vm1270_vm4, %v3427_v15  ;;  %v1618_v5 = vpop.permute.xlu0 %1617 }
 0x50e   :  { %3011 = vmatprep.subr.mxu0 %v3169_v1  ;;  %3020 = vmatprep.subr.mxu1 %v3169_v1 }
 0x50f   :  { %3017 = vmatprep.mubr.msk.f32.mxu0 %vm3170_vm0, %v3169_v1 }
 0x510   :  { %3007 = vmatmul.mubr.msk.f32.vlgmr.msra.gmra.mxu1 %vm1270_vm4, %v1531_v2  ;;  %v1705_v8 = vpop.permute.xlu1 %1704 }
 0x511   :  { %3012 = vmatpush3.xpose.msk.msra.mxu0 %vm1270_vm4, %v3448_v20  ;;  %3021 = vmatpush3.xpose.msk.msra.mxu1 %vm1270_vm4, %v3456_v23 }
 0x512   :  { %3013 = vmatprep.subr.mxu0 %v3169_v1  ;;  %3022 = vmatprep.subr.mxu1 %v3169_v1 }
 0x513   :  { %3028 = vmatprep.mubr.msk.f32.mxu1 %vm3170_vm0, %v3169_v1 }
 0x515   :  { %3014 = vmatpush3.xpose.msk.msra.mxu0 %vm1270_vm4, %v3464_v24  ;;  %3023 = vmatpush3.xpose.msk.msra.mxu1 %vm1270_vm4, %v3473_v26  ;;  %v1964_v24 = vld [vmem:[%s3954_s5] sm:$0xff] }
 0x516   :  { %3015 = vmatprep.subr.mxu0 %v3169_v1  ;;  %3024 = vmatprep.subr.mxu1 %v3169_v1 }
 0x519   :  { %3016 = vmatpush3.xpose.msk.msra.mxu0 %vm1270_vm4, %v3480_v27  ;;  %3025 = vmatpush3.xpose.msk.msra.mxu1 %vm1270_vm4, %v3487_v28  ;;  %v1879_v23 = vpop.permute.xlu1 %1878 }
 0x51a   :  { %v1792_v6 = vpop.permute.xlu0 %1791  ;;  %3026 = vmatprep.subr.mxu1 %v3169_v1  ;;  %3031 = vmatprep.subr.mxu0 %v3169_v1 }
 0x51c   :  { %3018 = vmatmul.mubr.msk.f32.vlgmr.msra.gmra.mxu0 %vm1270_vm4, %v1618_v5 }
 0x51d   :  { %3027 = vmatpush3.xpose.msk.msra.mxu1 %vm1270_vm4, %v3498_v30  ;;  %3032 = vmatpush3.xpose.msk.msra.mxu0 %vm1270_vm4, %v3506_v31  ;;  %v2081_v26 = vpop.permute.xlu1 %2080 }
 0x51e   :  { %v2079_v7 = vpop.permute.xlu0 %2078  ;;  %3033 = vmatprep.subr.mxu0 %v3169_v1  ;;  %3042 = vmatprep.subr.mxu1 %v3169_v1 }
 0x51f   :  { %3039 = vmatprep.mubr.msk.f32.mxu0 %vm3170_vm0, %v3169_v1 }
 0x520   :  { %3029 = vmatmul.mubr.msk.f32.vlgmr.msra.gmra.mxu1 %vm1270_vm4, %v1705_v8 }
 0x521   :  { %3034 = vmatpush3.xpose.msk.msra.mxu0 %vm1270_vm4, %v3520_v33  ;;  %3043 = vmatpush3.xpose.msk.msra.mxu1 %vm1270_vm4, %v3528_v34  ;;  %v2085_v33 = vpop.permute.xlu1 %2084  ;;  %v1968_v34 = vld [vmem:[%s3955_s6 + $0x18] sm:$0xff] }
 0x522   :  { %v2083_v9 = vpop.permute.xlu0 %2082  ;;  %3035 = vmatprep.subr.mxu0 %v3169_v1  ;;  %3044 = vmatprep.subr.mxu1 %v3169_v1 }
 0x523   :  { %3050 = vmatprep.mubr.msk.f32.mxu1 %vm3170_vm0, %v3169_v1 }
 0x525   :  { %3036 = vmatpush3.xpose.msk.msra.mxu0 %vm1270_vm4, %v3536_v35  ;;  %3045 = vmatpush3.xpose.msk.msra.mxu1 %vm1270_vm4, %v3543_v36  ;;  %v1967_v35 = vld [vmem:[%s3955_s6 + $0x10] sm:$0xff]  ;;  %v1966_v36 = vld [vmem:[%s3955_s6 + $0x8] sm:$0xff] }
 0x526   :  { %v161_v13 = vpop.permute.xlu0 %160  ;;  %3037 = vmatprep.subr.mxu0 %v3169_v1  ;;  %3046 = vmatprep.subr.mxu1 %v3169_v1 }
 0x527   :  { %v163_v15 = vadd.f32 %v161_v13, %v3304_v22 }
 0x529   :  { %3038 = vmatpush3.xpose.msk.msra.mxu0 %vm1270_vm4, %v3550_v37  ;;  %3047 = vmatpush3.xpose.msk.msra.mxu1 %vm1270_vm4, %v3557_v38  ;;  %v2258_v16 = vrot.slane %v163_v15, 2  ;;  %v2257_v20 = vrot.slane %v163_v15, 1  ;;  %v2259_v22 = vrot.slane %v163_v15, 3  ;;  %v2261_v27 = vrot.slane %v163_v15, 5  ;;  %v1965_v37 = vld [vmem:[%s3955_s6] sm:$0xff] }
 0x52a   :  { %3048 = vmatprep.subr.mxu1 %v3169_v1  ;;  %v2260_v28 = vrot.slane %v163_v15, 4  ;;  %v2263_v30 = vrot.slane %v163_v15, 7  ;;  %v2262_v31 = vrot.slane %v163_v15, 6  ;;  %3053 = vmatprep.subr.mxu0 %v1968_v34 }
 0x52b   :  { %2268 = vrot.lane.b32.xlu0 %v2258_v16, %s3173_s1  ;;  %2266 = vrot.lane.b32.xlu1 %v2257_v20, %s3173_s1 }
 0x52c   :  { %3040 = vmatmul.mubr.msk.f32.vlgmr.msra.gmra.mxu0 %vm1270_vm4, %v1792_v6 }
 0x52d   :  { %3049 = vmatpush3.xpose.msk.msra.mxu1 %vm1270_vm4, %v3566_v39  ;;  %3054 = vmatpush3.msra.mxu0 %v1968_v34 }
 0x52e   :  { %3067 = vmatprep.subr.mxu1 %v1964_v24  ;;  %3055 = vmatprep.subr.mxu0 %v1967_v35 }
 0x52f   :  { %2270 = vrot.lane.b32.xlu0 %v2259_v22, %s3173_s1  ;;  %2264 = vrot.lane.b32.xlu1 %v163_v15, %s3173_s1 }
 0x530   :  { %3051 = vmatmul.mubr.msk.f32.vlgmr.msra.gmra.mxu1 %vm1270_vm4, %v1879_v23  ;;  %3056 = vmatpush3.msra.mxu0 %v1967_v35 }
 0x531   :  { %3069 = vmatprep.mubr.msk.f32.mxu1 %vm1270_vm4, %v2079_v7  ;;  %3068 = vmatpush3.msra.mxu1 %v1964_v24 }
 0x532   :  { %3075 = vmatprep.subr.mxu1 %v3169_v1  ;;  %3057 = vmatprep.subr.mxu0 %v1966_v36 }
 0x533   :  { %2274 = vrot.lane.b32.xlu0 %v2261_v27, %s3173_s1  ;;  %2272 = vrot.lane.b32.xlu1 %v2260_v28, %s3173_s1 }
 0x534   :  { %3070 = vmatmul.mubr.msk.f32.vlgmr.msra.gmra.mxu1 %vm1270_vm4, %v2081_v26  ;;  %3058 = vmatpush3.msra.mxu0 %v1966_v36 }
 0x535   :  { %3072 = vmatprep.mubr.msk.f32.mxu1 %vm1270_vm4, %v2083_v9  ;;  %3059 = vmatprep.subr.mxu0 %v1965_v37 }
 0x536   :  { %3060 = vmatpush3.msra.mxu0 %v1965_v37 }
 0x537   :  { %2278 = vrot.lane.b32.xlu0 %v2263_v30, %s3173_s1  ;;  %2276 = vrot.lane.b32.xlu1 %v2262_v31, %s3173_s1 }
 0x538   :  { %3073 = vmatmul.mubr.msk.f32.gmra.mxu1 %vm1270_vm4, %v2085_v33  ;;  %3086 = vmatprep.subr.mxu0 %v3169_v1 }
 0x539   :  { %3083 = vmatprep.mubr.msk.f32.mxu1 %vm3170_vm0, %v3169_v1 }
 0x59d   :  { %v2267_v28 = vpop.permute.xlu1 %2266  ;;  %v2269_v34 = vpop.permute.xlu0 %2268 }
 0x5bc   :  { %v1351_v38 = vpop.f32.mrf.mxu0 }
 0x5be   :  { %v2975_v39 = vpop.f32.mrf.mxu0 }
 0x5c0   :  { %v1438_v54 = vpop.f32.mrf.mxu1 }
 0x5c1   :  { %v1977_v56 = vcombine.low %v1351_v38, %v1438_v54 }
 0x5c2   :  { %v2986_v47 = vpop.f32.mrf.mxu1 }
 0x5c3   :  { %3061 = vmatprep.mubr.msk.f32.mxu0 %vm76_vm1, %v1977_v56 }
 0x5cc   :  { %v1525_v17 = vpop.f32.mrf.mxu0 }
 0x5ce   :  { %v2997_v32 = vpop.f32.mrf.mxu0 }
 0x5d0   :  { %v1612_v58 = vpop.f32.mrf.mxu1 }
 0x5d1   :  { %v1978_v55 = vcombine.low %v1525_v17, %v1612_v58 }
 0x5d2   :  { %v3008_v4 = vpop.f32.mrf.mxu1 }
 0x5d3   :  { %3062 = vmatmul.mubr.msk.f32.vlgmr.msra.gmra.mxu0 %vm76_vm1, %v1978_v55 }
 0x5dc   :  { %v1699_v43 = vpop.f32.mrf.mxu0 }
 0x5de   :  { %v3019_v10 = vpop.f32.mrf.mxu0 }
 0x5e0   :  { %v1786_v60 = vpop.f32.mrf.mxu1 }
 0x5e1   :  { %v1979_v11 = vcombine.low %v1699_v43, %v1786_v60 }
 0x5e2   :  { %v3030_v12 = vpop.f32.mrf.mxu1 }
 0x5e3   :  { %3064 = vmatprep.mubr.msk.f32.mxu0 %vm76_vm1, %v1979_v11  ;;  %v2265_v11 = vpop.permute.xlu1 %2264 }
 0x5ec   :  { %v1873_v57 = vpop.f32.mrf.mxu0 }
 0x5ee   :  { %v3041_v59 = vpop.f32.mrf.mxu0 }
 0x5f0   :  { %v1960_v44 = vpop.f32.mrf.mxu1 }
 0x5f1   :  { %v1980_v62 = vcombine.low %v1873_v57, %v1960_v44  ;;  %v2271_v44 = vpop.permute.xlu0 %2270 }
 0x5f2   :  { %v3052_v0 = vpop.f32.mrf.mxu1 }
 0x5f3   :  { %3065 = vmatmul.mubr.msk.f32.gmra.mxu0 %vm76_vm1, %v1980_v62 }
 0x5f4   :  { %3094 = vmatprep.mubr.msk.f32.mxu0 %vm3170_vm0, %v3169_v1  ;;  %v3071_v41 = vpop.f32.mrf.mxu1 }
 0x5f6   :  { %v2160_v53 = vpop.f32.mrf.mxu1 }
 0x5f8   :  { %v3074_v20 = vpop.f32.mrf.mxu1 }
 0x5fa   :  { %v2170_v31 = vpop.f32.mrf.mxu1 }
 0x693   :  { %v3063_v61 = vpop.f32.mrf.mxu0 }
 0x694   :  { %v2166_v51 = vadd.f32 %v3071_v41, %v3063_v61 }
 0x695   :  { %v2055_v49 = vpop.f32.mrf.mxu0 }
 0x696   :  { %v2161_v46 = vadd.f32 %v2160_v53, %v2055_v49  ;;  %v2184_v52 = vcombine.high %v2166_v51, %v2166_v51  ;;  %v2193_v48 = vmul.f32 %v3144_v25, %v2166_v51 }
 0x698   :  { %v2183_v63 = vcombine.high %v2161_v46, %v2161_v46  ;;  %v2191_v21 = vmul.f32 %v3144_v25, %v2161_v46  ;;  %v2194_v3 = vmul.f32 %v3144_v25, %v2184_v52  ;;  %v2214_v50 = vsel %vm2199_vm5, %v2193_v48, 0.0 }
 0x699   :  { %v2215_v42 = vrot.slane %v2214_v50, 4 }
 0x69a   :  { %v2192_v45 = vmul.f32 %v3144_v25, %v2183_v63  ;;  %v2200_v40 = vsel %vm2199_vm5, %v2191_v21, 0.0  ;;  %v2221_v2 = vsel %vm2199_vm5, %v2194_v3, 0.0  ;;  %v2273_v3 = vpop.permute.xlu1 %2272 }
 0x69b   :  { %v2201_v5 = vrot.slane %v2200_v40, 4  ;;  %v2216_v6 = vadd.f32 %v2215_v42, %v2214_v50  ;;  %v2222_v7 = vrot.slane %v2221_v2, 4 }
 0x69c   :  { %v2207_v19 = vsel %vm2199_vm5, %v2192_v45, 0.0 }
 0x69d   :  { %v2208_v29 = vrot.slane %v2207_v19, 4  ;;  %v2202_v9 = vadd.f32 %v2201_v5, %v2200_v40  ;;  %v2217_v13 = vrot.slane %v2216_v6, 2  ;;  %v2223_v15 = vadd.f32 %v2222_v7, %v2221_v2  ;;  %v2275_v2 = vpop.permute.xlu0 %2274 }
 0x69f   :  { %v2209_v18 = vadd.f32 %v2208_v29, %v2207_v19  ;;  %v2203_v23 = vrot.slane %v2202_v9, 2  ;;  %v2218_v24 = vadd.f32 %v2217_v13, %v2216_v6  ;;  %v2224_v22 = vrot.slane %v2223_v15, 2 }
 0x6a1   :  { %v2210_v8 = vrot.slane %v2209_v18, 2  ;;  %v2204_v35 = vadd.f32 %v2203_v23, %v2202_v9  ;;  %v2219_v39 = vrot.slane %v2218_v24, 1  ;;  %v2225_v54 = vadd.f32 %v2224_v22, %v2223_v15  ;;  %v2277_v22 = vpop.permute.xlu1 %2276 }
 0x6a3   :  { %v2211_v16 = vadd.f32 %v2210_v8, %v2209_v18  ;;  %v2205_v4 = vrot.slane %v2204_v35, 1  ;;  %v2220_v62 = vadd.f32 %v2219_v39, %v2218_v24  ;;  %v2226_v0 = vrot.slane %v2225_v54, 1 }
 0x6a5   :  { %v2212_v26 = vrot.slane %v2211_v16, 1  ;;  %v2206_v51 = vadd.f32 %v2205_v4, %v2204_v35  ;;  %v2227_v19 = vadd.f32 %v2226_v0, %v2225_v54  ;;  %v2290_v21 = vadd.f32 %v2269_v34, %v2220_v62 }
 0x6a7   :  { %v2213_v56 = vadd.f32 %v2212_v26, %v2211_v16  ;;  %v2288_v5 = vadd.f32 %v2265_v11, %v2206_v51  ;;  %v2291_v9 = vadd.f32 %v2271_v44, %v2227_v19  ;;  %v2307_v16 = vrot.slane %v2290_v21, 6 }
 0x6a9   :  { %v3863_v41 = vadd.f32 %v2267_v28, %v2213_v56 }
 0x6ab   :  { %v2304_v29 = vrot.slane %v3863_v41, 7 }
 0x6ad   :  { %v2306_v15 = vsel %vm2305_vm6, %v2304_v29, %v2288_v5 }
 0x6ae   :  { %v2309_v28 = vsel %vm2308_vm7, %v2307_v16, %v2306_v15 }
 0x6b3   :  { %v3066_v27 = vpop.f32.mrf.mxu0 }
 0x6b4   :  { %v2176_v30 = vadd.f32 %v3074_v20, %v3066_v27 }
 0x6b5   :  { %v2065_v33 = vpop.f32.mrf.mxu0 }
 0x6b6   :  { %v2186_v36 = vcombine.high %v2176_v30, %v2176_v30  ;;  %v2197_v37 = vmul.f32 %v3144_v25, %v2176_v30  ;;  %v2171_v38 = vadd.f32 %v2170_v31, %v2065_v33  ;;  %v2279_v30 = vpop.permute.xlu0 %2278  ;;  %v2310_v33 = vrot.slane %v2291_v9, 5 }
 0x6b8   :  { %v2198_v47 = vmul.f32 %v3144_v25, %v2186_v36  ;;  %v2242_v17 = vsel %vm2199_vm5, %v2197_v37, 0.0  ;;  %v2185_v32 = vcombine.high %v2171_v38, %v2171_v38  ;;  %v2195_v58 = vmul.f32 %v3144_v25, %v2171_v38 }
 0x6b9   :  { %v2243_v55 = vrot.slane %v2242_v17, 4  ;;  %v2312_v37 = vsel %vm2311_vm8, %v2310_v33, %v2309_v28 }
 0x6ba   :  { %v2249_v43 = vsel %vm2199_vm5, %v2198_v47, 0.0  ;;  %v2196_v10 = vmul.f32 %v3144_v25, %v2185_v32  ;;  %v2228_v60 = vsel %vm2199_vm5, %v2195_v58, 0.0 }
 0x6bb   :  { %v2244_v12 = vadd.f32 %v2243_v55, %v2242_v17  ;;  %v2250_v57 = vrot.slane %v2249_v43, 4  ;;  %v2229_v59 = vrot.slane %v2228_v60, 4 }
 0x6bc   :  { %v2235_v61 = vsel %vm2199_vm5, %v2196_v10, 0.0 }
 0x6bd   :  { %v2245_v53 = vrot.slane %v2244_v12, 2  ;;  %v2251_v49 = vadd.f32 %v2250_v57, %v2249_v43  ;;  %v2230_v46 = vadd.f32 %v2229_v59, %v2228_v60  ;;  %v2236_v63 = vrot.slane %v2235_v61, 4 }
 0x6bf   :  { %v2246_v45 = vadd.f32 %v2245_v53, %v2244_v12  ;;  %v2252_v25 = vrot.slane %v2251_v49, 2  ;;  %v2231_v52 = vrot.slane %v2230_v46, 2  ;;  %v2237_v48 = vadd.f32 %v2236_v63, %v2235_v61 }
 0x6c1   :  { %v2247_v50 = vrot.slane %v2246_v45, 1  ;;  %v2253_v42 = vadd.f32 %v2252_v25, %v2251_v49  ;;  %v2232_v40 = vadd.f32 %v2231_v52, %v2230_v46  ;;  %v2238_v18 = vrot.slane %v2237_v48, 2 }
 0x6c3   :  { %v2254_v6 = vrot.slane %v2253_v42, 1  ;;  %v2233_v7 = vrot.slane %v2232_v40, 1  ;;  %v2239_v8 = vadd.f32 %v2238_v18, %v2237_v48  ;;  %v2248_v13 = vadd.f32 %v2247_v50, %v2246_v45 }
 0x6c5   :  { %v2234_v20 = vadd.f32 %v2233_v7, %v2232_v40  ;;  %v2240_v23 = vrot.slane %v2239_v8, 1  ;;  %v2255_v24 = vadd.f32 %v2254_v6, %v2253_v42  ;;  %v2294_v31 = vadd.f32 %v2277_v22, %v2248_v13  ;;  %v2464_v22 = vld [vmem:[%s3956_s7] sm:$0xff] }
 0x6c7   :  { %v2241_v26 = vadd.f32 %v2240_v23, %v2239_v8  ;;  %v2292_v27 = vadd.f32 %v2273_v3, %v2234_v20  ;;  %v2295_v35 = vadd.f32 %v2279_v30, %v2255_v24  ;;  %v2319_v54 = vrot.slane %v2294_v31, 2  ;;  %v2467_v20 = vld [vmem:[%s3956_s7 + $0x18] sm:$0xff]  ;;  %v2466_v23 = vld [vmem:[%s3956_s7 + $0x10] sm:$0xff]  ;;  %v2465_v24 = vld [vmem:[%s3956_s7 + $0x8] sm:$0xff] }
 0x6c8   :  { %3076 = vmatpush3.msra.mxu1 %v2467_v20  ;;  %v2418_v30 = vsub.s32 2, %v3289_v14  ;;  %v2553_v20 = vld [vmem:[%s3957_s8 + $0x8] sm:$0xff] }
 0x6c9   :  { %v2293_v34 = vadd.f32 %v2275_v2, %v2241_v26  ;;  %v2313_v36 = vrot.slane %v2292_v27, 4  ;;  %v2322_v47 = vrot.slane %v2295_v35, 1  ;;  %3077 = vmatprep.subr.mxu1 %v3169_v1 }
 0x6ca   :  { %3078 = vmatpush3.msra.mxu1 %v2466_v23  ;;  %v2552_v23 = vld [vmem:[%s3957_s8] sm:$0xff] }
 0x6cb   :  { %v2315_v38 = vsel %vm2314_vm9, %v2313_v36, %v2312_v37  ;;  %v2316_v39 = vrot.slane %v2293_v34, 3  ;;  %3079 = vmatprep.subr.mxu1 %v3169_v1 }
 0x6cc   :  { %3080 = vmatpush3.msra.mxu1 %v2465_v24  ;;  %v2470_v24 = vsub.s32 4, %v3289_v14 }
 0x6cd   :  { %v2318_v56 = vsel %vm2317_vm10, %v2316_v39, %v2315_v38  ;;  %3081 = vmatprep.subr.mxu1 %v3169_v1 }
 0x6ce   :  { %v2321_v17 = vsel %vm2320_vm11, %v2319_v54, %v2318_v56  ;;  %3082 = vmatpush3.msra.mxu1 %v2464_v22 }
 0x6cf   :  { %v2324_v32 = vsel %vm2323_vm12, %v2322_v47, %v2321_v17 }
 0x6d0   :  { %v2326_v58 = vsel %vm76_vm1, %v2324_v32, 0.0 }
 0x6d1   :  { %2327 = vadd.xlane.f32.xlu1 %v2326_v58 }
 0x75a   :  { %v2328_v55 = vpop.xlane.xlu1 %2327 }
 0x75b   :  { %v2330_v4 = vmul.f32 0.03125, %v2328_v55 }
 0x75d   :  { %v2332_v43 = vrot.slane %v2330_v4, 1  ;;  %v2333_v10 = vrot.slane %v2330_v4, 2  ;;  %v2334_v60 = vrot.slane %v2330_v4, 3  ;;  %v2335_v11 = vrot.slane %v2330_v4, 4 }
 0x75e   :  { %v2336_v12 = vrot.slane %v2330_v4, 5  ;;  %v2337_v57 = vrot.slane %v2330_v4, 6  ;;  %v2338_v59 = vrot.slane %v2330_v4, 7  ;;  %v2347_v44 = vsub.f32 %v2288_v5, %v2330_v4 }
 0x75f   :  { %v2348_v62 = vsub.f32 %v3863_v41, %v2332_v43  ;;  %v2349_v0 = vsub.f32 %v2290_v21, %v2333_v10  ;;  %v2350_v61 = vsub.f32 %v2291_v9, %v2334_v60  ;;  %v2351_v53 = vsub.f32 %v2292_v27, %v2335_v11 }
 0x760   :  { %v2352_v49 = vsub.f32 %v2293_v34, %v2336_v12  ;;  %v2353_v46 = vsub.f32 %v2294_v31, %v2337_v57  ;;  %v2354_v63 = vsub.f32 %v2295_v35, %v2338_v59  ;;  %v2355_v48 = vmul.f32 %v2347_v44, %v2347_v44  ;;  %v3904_v34 = vld [vmem:[%s3958_s9] sm:$0xff] }
 0x761   :  { %v2356_v51 = vmul.f32 %v2348_v62, %v2348_v62  ;;  %v2357_v45 = vmul.f32 %v2349_v0, %v2349_v0  ;;  %v2358_v25 = vmul.f32 %v2350_v61, %v2350_v61  ;;  %v2359_v52 = vmul.f32 %v2351_v53, %v2351_v53 }
 0x762   :  { %v2360_v19 = vmul.f32 %v2352_v49, %v2352_v49  ;;  %v2361_v50 = vmul.f32 %v2353_v46, %v2353_v46  ;;  %v2362_v42 = vmul.f32 %v2354_v63, %v2354_v63  ;;  %v2430_v31 = vsub.s32 3, %v3289_v14 }
 0x763   :  { %v2371_v29 = vrot.slane %v2356_v51, 7  ;;  %v2373_v3 = vrot.slane %v2357_v45, 6  ;;  %v2375_v18 = vrot.slane %v2358_v25, 5  ;;  %v2377_v21 = vrot.slane %v2359_v52, 4 }
 0x764   :  { %v2379_v5 = vrot.slane %v2360_v19, 3  ;;  %v2381_v7 = vrot.slane %v2361_v50, 2  ;;  %v2383_v9 = vrot.slane %v2362_v42, 1  ;;  %v2419_v35 = vrot.slane %v3904_v34, %v2418_v30 }
 0x765   :  { %v2372_v40 = vsel %vm2305_vm6, %v2371_v29, %v2355_v48  ;;  %v2431_v36 = vrot.slane %v3904_v34, %v2430_v31  ;;  %v2471_v22 = vrot.slane %v3904_v34, %v2470_v24 }
 0x766   :  { %v2374_v41 = vsel %vm2308_vm7, %v2373_v3, %v2372_v40 }
 0x767   :  { %v2376_v2 = vsel %vm2311_vm8, %v2375_v18, %v2374_v41 }
 0x768   :  { %v2378_v6 = vsel %vm2314_vm9, %v2377_v21, %v2376_v2 }
 0x769   :  { %v2380_v8 = vsel %vm2317_vm10, %v2379_v5, %v2378_v6 }
 0x76a   :  { %v2382_v13 = vsel %vm2320_vm11, %v2381_v7, %v2380_v8 }
 0x76b   :  { %v2384_v15 = vsel %vm2323_vm12, %v2383_v9, %v2382_v13  ;;  %v3146_v9 = vld [vmem:[%s3949_s0] sm:$0xff] }
 0x76c   :  { %v2386_v16 = vsel %vm76_vm1, %v2384_v15, 0.0  ;;  %v2555_v15 = vld [vmem:[%s3957_s8 + $0x18] sm:$0xff] }
 0x76d   :  { %2387 = vadd.xlane.f32.xlu0 %v2386_v16  ;;  %3087 = vmatpush3.msra.mxu0 %v2555_v15  ;;  %v2554_v16 = vld [vmem:[%s3957_s8 + $0x10] sm:$0xff]  ;;  %s3174_s8 = smov [#allocation2]  }
 0x76e   :  { %3088 = vmatprep.subr.mxu0 %v3169_v1  ;;  %s2664_s15 = sshll.u32 %s3174_s8, 4  ;;  %s2665_s15 = int_to_ptr.vmem [resolvable:$true] %s2664_s15 }
 0x76f   :  { %3089 = vmatpush3.msra.mxu0 %v2554_v16  ;;  %s3147_s16 = scalar_lea.vmem %s2665_s15, 128  ;;  %p3152_p1 = scmp.lt.s32.totalorder %s2665_s15, %s2665_s15 }
 0x770   :  { %3090 = vmatprep.subr.mxu0 %v3169_v1  ;;  %p3148_p0 = scmp.ne.s32.totalorder %s2665_s15, %s3147_s16  ;;  %p3153_p2 = scmp.lt.s32.totalorder %s3147_s16, %s3147_s16 }
 0x771   :  { %3091 = vmatpush3.msra.mxu0 %v2553_v20 }
 0x772   :  { %3092 = vmatprep.subr.mxu0 %v3169_v1  ;;  %p3154_p3 = por %p3153_p2, %p3152_p1 }
 0x773   :  { %3093 = vmatpush3.msra.mxu0 %v2552_v23 }
 0x774   :  { %p3155_p4 = pnand %p3154_p3, %p3148_p0 }
 0x7f6   :  { %v2388_v26 = vpop.xlane.xlu0 %2387 }
 0x7f7   :  { %v2389_v27 = vmul.f32 0.03125, %v2388_v26 }
 0x7f9   :  { %v2390_v28 = vadd.f32 1e-05, %v2389_v27 }
 0x7fb   :  { %3136 = vrsqrt.f32 %v2390_v28 }
 0x808   :  { %v3137_v33 = vpop.eup %3136 }
 0x809   :  { %v2393_v37 = vrot.slane %v3137_v33, 1  ;;  %v2394_v38 = vrot.slane %v3137_v33, 2  ;;  %v2395_v39 = vrot.slane %v3137_v33, 3  ;;  %v2396_v54 = vrot.slane %v3137_v33, 4 }
 0x80a   :  { %v2397_v56 = vrot.slane %v3137_v33, 5  ;;  %v2398_v47 = vrot.slane %v3137_v33, 6  ;;  %v2399_v17 = vrot.slane %v3137_v33, 7  ;;  %v2408_v32 = vmul.f32 %v3137_v33, %v2347_v44 }
 0x80b   :  { %v2409_v58 = vmul.f32 %v2393_v37, %v2348_v62  ;;  %v2410_v55 = vmul.f32 %v2394_v38, %v2349_v0  ;;  %v2411_v4 = vmul.f32 %v2395_v39, %v2350_v61  ;;  %v2412_v43 = vmul.f32 %v2396_v54, %v2351_v53 }
 0x80c   :  { %v2413_v10 = vmul.f32 %v2397_v56, %v2352_v49  ;;  %v2414_v60 = vmul.f32 %v2398_v47, %v2353_v46  ;;  %v2415_v11 = vmul.f32 %v2399_v17, %v2354_v63  ;;  %v2420_v12 = vmul.f32 %v2419_v35, %v2408_v32 }
 0x80d   :  { %v2421_v57 = vmul.f32 %v2419_v35, %v2409_v58  ;;  %v2422_v59 = vmul.f32 %v2419_v35, %v2410_v55  ;;  %v2423_v51 = vmul.f32 %v2419_v35, %v2411_v4  ;;  %v2424_v45 = vmul.f32 %v2419_v35, %v2412_v43 }
 0x80e   :  { %v2425_v25 = vmul.f32 %v2419_v35, %v2413_v10  ;;  %v2426_v52 = vmul.f32 %v2419_v35, %v2414_v60  ;;  %v2427_v48 = vmul.f32 %v2419_v35, %v2415_v11  ;;  %v2432_v44 = vadd.f32 %v2431_v36, %v2420_v12 }
 0x80f   :  { %v2433_v19 = vadd.f32 %v2431_v36, %v2421_v57  ;;  %v2434_v29 = vadd.f32 %v2431_v36, %v2422_v59  ;;  %v2435_v3 = vadd.f32 %v2431_v36, %v2423_v51  ;;  %v2436_v50 = vadd.f32 %v2431_v36, %v2424_v45 }
 0x810   :  { %v2437_v62 = vadd.f32 %v2431_v36, %v2425_v25  ;;  %v2438_v53 = vadd.f32 %v2431_v36, %v2426_v52  ;;  %v2439_v49 = vadd.f32 %v2431_v36, %v2427_v48  ;;  %v2558_v37 = vsub.s32 5, %v3289_v14 }
 0x811   :  { %v2448_v0 = vrot.slane %v2433_v19, 7  ;;  %v2450_v61 = vrot.slane %v2434_v29, 6  ;;  %v2452_v63 = vrot.slane %v2435_v3, 5  ;;  %v2454_v40 = vrot.slane %v2436_v50, 4 }
 0x812   :  { %v2456_v41 = vrot.slane %v2437_v62, 3  ;;  %v2458_v2 = vrot.slane %v2438_v53, 2  ;;  %v2460_v6 = vrot.slane %v2439_v49, 1  ;;  %v2559_v1 = vrot.slane %v3904_v34, %v2558_v37 }
 0x813   :  { %v2449_v46 = vsel %vm2305_vm6, %v2448_v0, %v2432_v44  ;;  %v2648_v60 = vsub.s32 6, %v3289_v14  ;;  %v2653_v11 = vsub.s32 7, %v3289_v14 }
 0x814   :  { %v2451_v42 = vsel %vm2308_vm7, %v2450_v61, %v2449_v46 }
 0x815   :  { %v2453_v18 = vsel %vm2311_vm8, %v2452_v63, %v2451_v42  ;;  %v2649_v12 = vrot.slane %v3904_v34, %v2648_v60  ;;  %v2654_v51 = vrot.slane %v3904_v34, %v2653_v11 }
 0x816   :  { %v2455_v21 = vsel %vm2314_vm9, %v2454_v40, %v2453_v18 }
 0x817   :  { %v2457_v5 = vsel %vm2317_vm10, %v2456_v41, %v2455_v21 }
 0x818   :  { %v2459_v7 = vsel %vm2320_vm11, %v2458_v2, %v2457_v5 }
 0x819   :  { %v2461_v8 = vsel %vm2323_vm12, %v2460_v6, %v2459_v7 }
 0x81a   :  { %v2463_v13 = vadd.f32 %v3146_v9, %v2461_v8 }
 0x81c   :  { %3084 = vmatmul.mubr.msk.f32.vlgmr.msra.gmra.mxu1 %vm76_vm1, %v2463_v13 }
 0x8dc   :  { %v2541_v26 = vpop.f32.mrf.mxu1 }
 0x8dd   :  { %v2542_v27 = vadd.f32 %v2541_v26, %v2471_v22 }
 0x8de   :  { %v3085_v28 = vpop.f32.mrf.mxu1 }
 0x8df   :  { %v2734_v30 = vmul.f32 -1.442695, %v2542_v27 }
 0x8e1   :  { %3138 = vpow2.f32 %v2734_v30 }
 0x8ee   :  { %v3139_v31 = vpop.eup %3138 }
 0x8ef   :  { %v2548_v33 = vadd.f32 1.0, %v3139_v31 }
 0x8f1   :  { %3140 = vrcp.f32 %v2548_v33 }
 0x8fe   :  { %v3141_v35 = vpop.eup %3140 }
 0x8ff   :  { %v2551_v36 = vmul.f32 %v3141_v35, %v2542_v27 }
 0x901   :  { %3095 = vmatmul.mubr.msk.f32.vlgmr.msra.gmra.mxu0 %vm76_vm1, %v2551_v36 }
 0x9c1   :  { %v2629_v38 = vpop.f32.mrf.mxu0 }
 0x9c2   :  { %v2630_v39 = vadd.f32 %v2629_v38, %v2559_v1 }
 0x9c3   :  { %v3096_v54 = vpop.f32.mrf.mxu0 }
 0x9c4   :  { %v2633_v56 = vsel %vm76_vm1, %v2630_v39, 0.0 }
 0x9c5   :  { %2634 = vadd.xlane.f32.xlu0 %v2633_v56 }
 0xa4e   :  { %v2635_v47 = vpop.xlane.xlu0 %2634 }
 0xa4f   :  { %v2636_v17 = vmul.f32 0.03125, %v2635_v47 }
 0xa51   :  { %v2637_v32 = vsub.f32 %v2630_v39, %v2636_v17 }
 0xa53   :  { %v2638_v58 = vmul.f32 %v2637_v32, %v2637_v32 }
 0xa55   :  { %v2639_v55 = vsel %vm76_vm1, %v2638_v58, 0.0 }
 0xa56   :  { %2640 = vadd.xlane.f32.xlu1 %v2639_v55 }
 0xadf   :  { %v2641_v4 = vpop.xlane.xlu1 %2640 }
 0xae0   :  { %v2642_v43 = vmul.f32 0.03125, %v2641_v4 }
 0xae2   :  { %v2643_v10 = vadd.f32 1e-05, %v2642_v43 }
 0xae4   :  { %3142 = vrsqrt.f32 %v2643_v10 }
 0xaf1   :  { %v3143_v57 = vpop.eup %3142 }
 0xaf2   :  { %v2645_v59 = vmul.f32 %v3143_v57, %v2637_v32 }
 0xaf4   :  { %v2650_v45 = vmul.f32 %v2649_v12, %v2645_v59 }
 0xaf6   :  { %v2655_v25 = vadd.f32 %v2654_v51, %v2650_v45 }
 0xaf8   :  { %v2656_v52 = vadd.f32 %v2655_v25, %v2463_v13 }
 0xafa   :  { %2657 = vst.msk [vmem:[#allocation2] sm:$0xff] %vm76_vm1, %v2656_v52 }
 0xafb   :  { %3158 = shalt.err (!%p3155_p4)
}
 0xafc   :  { %2667 = dma.vmem_to_hbm [thread:$0]  %s2665_s15, 128, %s3959_s10, [#allocation3]  }
 0xafd   :  { %3167 = dma.done.wait [#allocation3], 128  }
 0xafe   :  { %3168 = vsyncadd [#allocation3], 4294967168 }
 0xaff   :  { %2671 = vsyncpa [#allocation3], 1 }

</bundles_post_ra>
